<compile_context>
chip_gen: v5e
topology: v5e:2x2
jax: 0.10.0
libtpu: 0.0.40
codegen_flags: <defaults>
</compile_context>

<pallas_src>
import functools

import jax
import jax.numpy as jnp
from jax import lax
from jax.experimental import pallas as pl
from jax.experimental.pallas import tpu as pltpu


def _round_up(x, m):
    return ((x + m - 1) // m) * m


# ----------------------------------------------------------------------------
# Tiled matmul kernel (fused fc + res_fc + el + er projection)
# ----------------------------------------------------------------------------
def _matmul_kernel(x_ref, w_ref, o_ref, acc_ref):
    @pl.when(pl.program_id(2) == 0)
    def _():
        acc_ref[...] = jnp.zeros_like(acc_ref)

    acc_ref[...] += jnp.dot(x_ref[...], w_ref[...],
                            preferred_element_type=jnp.float32)

    @pl.when(pl.program_id(2) == pl.num_programs(2) - 1)
    def _():
        o_ref[...] = acc_ref[...].astype(o_ref.dtype)


def linear(x, w):
    """x @ w. `w` is pre-padded at init to (Kp, Nop) multiples of 128, bf16.

    Output kept f32 (it feeds el/er logits and the residual); operands are bf16 so
    HBM reads are halved and the MXU runs at bf16 rate. The caller guarantees M is a
    multiple of 8 (node-padded) and a multiple of 256 whenever M > 256."""
    M, K = x.shape
    Kp, Nop = w.shape
    x = x.astype(jnp.bfloat16)
    if K < Kp:
        x = jnp.pad(x, ((0, 0), (0, Kp - K)))          # zero-pad contraction dim

    tm = 256 if M % 256 == 0 else M                     # v5e: 128 also fine
    tn = 256 if Nop % 256 == 0 else 128                 # lane-dense output tiles
    tk = 512 if Kp % 512 == 0 else (256 if Kp % 256 == 0 else 128)

    out = pl.pallas_call(
        _matmul_kernel,
        out_shape=jax.ShapeDtypeStruct((M, Nop), jnp.float32),
        grid=(M // tm, Nop // tn, Kp // tk),
        in_specs=[pl.BlockSpec((tm, tk), lambda i, j, k: (i, k)),
                  pl.BlockSpec((tk, tn), lambda i, j, k: (k, j))],
        out_specs=pl.BlockSpec((tm, tn), lambda i, j, k: (i, j)),
        scratch_shapes=[pltpu.VMEM((tm, tn), jnp.float32)],
        compiler_params=pltpu.CompilerParams(
            dimension_semantics=("parallel", "parallel", "arbitrary")),
    )(x, w)
    return out


# ----------------------------------------------------------------------------
# Flash-style tiled GAT attention kernel (edge softmax + feat/label aggregation)
# ----------------------------------------------------------------------------
def _gat_attn_kernel(occ_ref, el_ref, er_ref, adj_ref, fy_ref, o_ref,
                     m_ref, l_ref, acc_ref, *, Hout, Ha, nk, negative_slope):
    qi = pl.program_id(0)
    ki = pl.program_id(1)

    @pl.when(ki == 0)
    def _():
        m_ref[...] = jnp.full_like(m_ref, -1e30)
        l_ref[...] = jnp.zeros_like(l_ref)
        acc_ref[...] = jnp.zeros_like(acc_ref)

    # Block-sparse skip: only tiles that actually contain edges do softmax work
    # (skipping is exact: an empty tile contributes p == 0 everywhere).
    @pl.when(occ_ref[qi * nk + ki] > 0)
    def _():
        # int8 adjacency tile, converted once and reused by every head.
        adjf = adj_ref[...].astype(jnp.float32)           # (TQ, TK)
        edge = adjf > 0.0

        for h in range(Hout):                             # static unroll over heads
            ha = min(h, Ha - 1)                           # DGL head-broadcast clamp
            # e[dst, src] = er[dst] + el[src]  (precomputed per node, no MXU work)
            e = er_ref[ha] + el_ref[ha]                   # (TQ,1)+(1,TK) -> (TQ,TK)
            e = jnp.where(e > 0, e, negative_slope * e)   # leaky relu
            e = jnp.where(edge, e, -1e30)                 # mask non-edges

            m_prev = m_ref[h]
            m_new = jnp.maximum(m_prev, jnp.max(e, axis=1, keepdims=True))
            alpha = jnp.exp(m_prev - m_new)
            # NOTE (invariant): p must be forced to 0 on non-edges. A dst row can
            # have zero edges inside this src tile while m_new is still -1e30, in
            # which case exp(e - m_new) = exp(0) = 1 would corrupt l/acc.
            p = jnp.where(edge, jnp.exp(e - m_new), 0.0)

            l_ref[h] = alpha * l_ref[h] + jnp.sum(p, axis=1, keepdims=True)
            acc_ref[h] = alpha * acc_ref[h] + jnp.dot(
                p.astype(fy_ref.dtype), fy_ref[h],
                preferred_element_type=jnp.float32)
            m_ref[h] = m_new

    @pl.when(ki == pl.num_programs(1) - 1)
    def _():
        inv_l = pl.reciprocal(jnp.maximum(l_ref[...], 1e-20), approx=True)
        o_ref[...] = (acc_ref[...] * inv_l).astype(o_ref.dtype)


def gat_attention(feat_h, el_h, er_h, adj_i8, occ, y_h, *, T, negative_slope=0.2):
    """feat_h: (Ha, Np, D); el_h: (Ha, 1, Np); er_h: (Ha, Np, 1); adj_i8: (Np, Np);
    occ: (nq*nq,) int32 tile-occupancy; y_h: (Hy, Np, C).

    Returns rst (Ha, Np, D) and y_pred (Hout, Np, C) in bf16, matching DGL's
    u_mul_e broadcasting between attention heads and label heads."""
    Ha, Np, D = feat_h.shape
    Hy, _, C = y_h.shape
    Hout = max(Ha, Hy)
    DC = D + C
    Dp = _round_up(DC, 128)                    # lane-dense fused output width
    nq = Np // T

    # Fused, lane-dense [feat | label] src slab per OUTPUT head, assembled directly
    # in bf16 (no f32 staging, no broadcast_to of the full feature tensor).
    slabs = []
    for h in range(Hout):
        ha, hy = min(h, Ha - 1), min(h, Hy - 1)
        slabs.append(jnp.concatenate(
            [feat_h[ha].astype(jnp.bfloat16), y_h[hy].astype(jnp.bfloat16)], axis=-1))
    featy = jnp.stack(slabs, axis=0)                       # (Hout, Np, DC) bf16
    featy = jnp.pad(featy, ((0, 0), (0, 0), (0, Dp - DC)))

    kernel = functools.partial(_gat_attn_kernel, Hout=Hout, Ha=Ha, nk=nq,
                               negative_slope=negative_slope)
    out = pl.pallas_call(
        kernel,
        out_shape=jax.ShapeDtypeStruct((Hout, Np, Dp), jnp.bfloat16),
        grid_spec=pltpu.PrefetchScalarGridSpec(
            num_scalar_prefetch=1,                         # tile-occupancy mask -> SMEM
            grid=(nq, nq),
            in_specs=[
                pl.BlockSpec((Ha, 1, T), lambda qi, ki, occ: (0, 0, ki)),     # el (src)
                pl.BlockSpec((Ha, T, 1), lambda qi, ki, occ: (0, qi, 0)),     # er (dst)
                pl.BlockSpec((T, T), lambda qi, ki, occ: (qi, ki)),           # adj int8
                pl.BlockSpec((Hout, T, Dp), lambda qi, ki, occ: (0, ki, 0)),  # [feat|y]
            ],
            out_specs=pl.BlockSpec((Hout, T, Dp), lambda qi, ki, occ: (0, qi, 0)),
            scratch_shapes=[pltpu.VMEM((Hout, T, 1), jnp.float32),   # running max m
                            pltpu.VMEM((Hout, T, 1), jnp.float32),   # running sum l
                            pltpu.VMEM((Hout, T, Dp), jnp.float32)], # accumulator
        ),
        compiler_params=pltpu.CompilerParams(
            # dst-tile axis independent (megacore-shardable); src-tile axis is the
            # online-softmax reduction -> last, arbitrary. Working set is a few MiB,
            # so default scoped VMEM limits are safe on every generation (incl. v7x).
            dimension_semantics=("parallel", "arbitrary")),
        # v5e note: pipeline_mode=pl.Buffered(3) on the adj/featy specs can further
        # hide DMA behind the EUP-heavy softmax loop on low-bandwidth parts.
    )(occ, el_h, er_h, adj_i8, featy)

    rst = out[:Ha, :, :D]            # attention heads only (extra heads are duplicates)
    y_pred = out[:, :, D:DC]         # all Hout label-propagation heads
    return rst, y_pred


# ----------------------------------------------------------------------------
# Model glue (plain JAX)
# ----------------------------------------------------------------------------
def gat_conv(params, adj_i8, occ, h, y, *, T):
    """One GATConv layer (residual=True, bias=True, no activation, eval-mode dropout).

    `h`, `y`, `adj_i8` are node-padded to Np rows (multiple of T)."""
    attn_l = params["attn_l"]                         # (1, H, D) -> static shapes only
    H, D = attn_l.shape[1], attn_l.shape[2]
    HD = H * D
    Np = h.shape[0]

    # Single fused matmul: columns = [fc | res_fc | el | er]; el/er logits are baked
    # into the weight at init, so they come out of the projection epilogue for free.
    proj = linear(h, params["w_fused"])               # (Np, Nop) f32
    feat = proj[:, :HD].reshape(Np, H, D)
    resval = proj[:, HD:2 * HD].reshape(Np, H, D)
    el = proj[:, 2 * HD:2 * HD + H]                   # (Np, H) src logits
    er = proj[:, 2 * HD + H:2 * HD + 2 * H]           # (Np, H) dst logits

    feat_h = jnp.transpose(feat, (1, 0, 2))           # (H, Np, D)
    el_h = jnp.transpose(el)[:, None, :]              # (H, 1, Np)
    er_h = jnp.transpose(er)[:, :, None]              # (H, Np, 1)
    y_h = jnp.transpose(y, (1, 0, 2))                 # (Hy, Np, C)

    rst_h, ypred_h = gat_attention(feat_h, el_h, er_h, adj_i8, occ, y_h, T=T)
    rst = jnp.transpose(rst_h, (1, 0, 2))             # (Np, H, D) bf16
    y_pred = jnp.transpose(ypred_h, (1, 0, 2)).astype(jnp.float32)

    rst = rst + resval + params["bias"].reshape(1, H, D)   # residual + bias (f32)
    return rst, y_pred


def gat_forward(params, adj, feat, y):
    N = feat.shape[0]
    # attention / matmul node tile: 256 (feedback range 256-512); single tile if small
    T = 256 if N > 256 else _round_up(N, 8)
    Np = _round_up(N, T)
    nq = Np // T

    # Pad the node dimension ONCE for the whole forward pass (no per-layer row pads).
    feat_p = jnp.pad(feat, ((0, Np - N), (0, 0)))
    y_p = jnp.pad(y, ((0, Np - N), (0, 0), (0, 0)))
    adj_p = jnp.pad(adj, ((0, Np - N), (0, Np - N)))

    adj_i8 = (adj_p > 0).astype(jnp.int8)             # 4x smaller N^2 HBM stream vs f32
    occ = (adj_p.reshape(nq, T, nq, T).sum(axis=(1, 3)) > 0).astype(jnp.int32)
    occ = occ.reshape(-1)                             # flat (nq*nq,) SMEM-friendly

    h = feat_p
    yy = y_p
    n_layers = len(params["convs"])
    for i in range(n_layers):
        rst, yy = gat_conv(params["convs"][i], adj_i8, occ, h, yy, T=T)
        h = rst
        if i < n_layers - 1:
            h = h.reshape(Np, -1)                     # flatten(1)
            # BatchNorm1d (training-mode batch stats, gamma=1, beta=0); stats taken
            # over the REAL N rows only so node padding cannot skew them.
            hv = h[:N]
            mean = jnp.mean(hv, axis=0, keepdims=True)
            var = jnp.mean((hv - mean) ** 2, axis=0, keepdims=True)
            h = (h - mean) * lax.rsqrt(var + 1e-5)
            h = jax.nn.relu(h)                        # activation; dropout = identity
    h = jnp.mean(h, axis=1)                           # (Np, n_classes)
    h = h + params["bias_last"]                       # ElementWiseLinear (bias only)
    yy = jnp.mean(yy, axis=1)
    yy = jax.nn.log_softmax(yy, axis=1)
    return h[:N], yy[:N]


# ----------------------------------------------------------------------------
# Deterministic parameter initialization (xavier-normal-like, gain=sqrt(2))
# ----------------------------------------------------------------------------
def _xavier_normal(key, shape, gain=1.4142135623730951):
    if len(shape) == 2:
        fan_out, fan_in = shape
    else:  # (1, H, D) attention params: PyTorch convention
        fan_out = shape[0] * shape[-1]
        fan_in = shape[1] * shape[-1]
    std = gain * (2.0 / (fan_in + fan_out)) ** 0.5
    return std * jax.random.normal(key, shape, jnp.float32)


def init_params(key, in_feats, n_hidden, n_classes, n_layers, n_heads):
    convs = []
    for i in range(n_layers):
        in_hidden = n_heads * n_hidden if i > 0 else in_feats
        out_hidden = n_hidden if i < n_layers - 1 else n_classes
        num_heads = n_heads if i < n_layers - 1 else 1
        key, k1, k2, k3, k4 = jax.random.split(key, 5)
        fc_w = _xavier_normal(k1, (num_heads * out_hidden, in_hidden))
        res_w = _xavier_normal(k4, (num_heads * out_hidden, in_hidden))
        attn_l = _xavier_normal(k2, (1, num_heads, out_hidden))
        attn_r = _xavier_normal(k3, (1, num_heads, out_hidden))

        # Fold el/er into extra weight columns:  el = (x W^T) . a_l  ==  x (W^T a_l)
        fc_w_h = fc_w.reshape(num_heads, out_hidden, in_hidden)
        w_el = jnp.einsum('hdi,hd->ih', fc_w_h, attn_l[0])        # (Din, H)
        w_er = jnp.einsum('hdi,hd->ih', fc_w_h, attn_r[0])        # (Din, H)
        # fused weight: [fc | res_fc | el | er], pre-transposed -> (Din, 2HD + 2H)
        w_fused = jnp.concatenate(
            [jnp.transpose(fc_w), jnp.transpose(res_w), w_el, w_er], axis=1)
        # Pre-pad once at init to lane/tile alignment (no per-call weight pad),
        # store bf16 (MXU operand dtype; halves weight HBM reads).
        din, dout = w_fused.shape
        w_fused = jnp.pad(w_fused, ((0, _round_up(din, 128) - din),
                                    (0, _round_up(dout, 128) - dout)))
        w_fused = w_fused.astype(jnp.bfloat16)

        convs.append(dict(
            w_fused=w_fused,
            attn_l=attn_l,
            attn_r=attn_r,
            bias=jnp.zeros((num_heads * out_hidden,), jnp.float32),
        ))
    # NOTE: no python ints inside the pytree -> safe to pass straight through jit;
    # head counts / feature widths are recovered from (static) array shapes.
    return dict(convs=convs,
                bias_last=jnp.zeros((n_classes,), jnp.float32))


# ----------------------------------------------------------------------------
# Main
# ----------------------------------------------------------------------------
if __name__ == "__main__":
    N = 16          # nodes
    in_feats = 8
    n_hidden = 16
    n_classes = 4
    n_layers = 2
    n_heads = 2

    key = jax.random.PRNGKey(0)
    key, kf, ky, kp = jax.random.split(key, 4)

    # node features (N, in_feats)
    feat = jax.random.normal(kf, (N, in_feats), jnp.float32)

    # labels for label propagation: (N, 1, n_classes) one-hot
    lbl = jax.random.randint(ky, (N,), 0, n_classes)
    y = jax.nn.one_hot(lbl, n_classes, dtype=jnp.float32)[:, None, :]

    # dense adjacency (dst, src): ring graph + self-loops (no 0-in-degree nodes)
    idx = jnp.arange(N)
    adj = jnp.zeros((N, N), jnp.float32)
    adj = adj.at[idx, idx].set(1.0)
    adj = adj.at[idx, (idx + 1) % N].set(1.0)
    adj = adj.at[idx, (idx - 1) % N].set(1.0)

    params = init_params(kp, in_feats, n_hidden, n_classes, n_layers, n_heads)

    h_out, y_out = jax.jit(gat_forward)(params, adj, feat, y)
    jax.block_until_ready((h_out, y_out))

    assert h_out.shape == (N, n_classes)
    assert y_out.shape == (N, n_classes)
    assert bool(jnp.all(jnp.isfinite(h_out))) and bool(jnp.all(jnp.isfinite(y_out)))
    print("KERNEL_OK")
</pallas_src>

<mosaic_0001>
module attributes {stable_mosaic.version = 11 : i64} {
  func.func @_matmul_kernel(%arg0: i32, %arg1: i32, %arg2: i32, %arg3: memref<16x128xbf16, #tpu.memory_space<vmem>>, %arg4: memref<128x128xbf16, #tpu.memory_space<vmem>>, %arg5: memref<16x128xf32, #tpu.memory_space<vmem>>, %arg6: memref<16x128xf32, #tpu.memory_space<vmem>>) attributes {dimension_semantics = [#tpu.dimension_semantics<parallel>, #tpu.dimension_semantics<parallel>, #tpu.dimension_semantics<arbitrary>], iteration_bounds = array<i64: 1, 1, 1>, scalar_prefetch = 0 : i64, scratch_operands = 1 : i64, tpu.core_type = #tpu.core_type<tc>, window_params = [{transform_indices = @transform_0, window_bounds = array<i64: 16, 128>}, {transform_indices = @transform_1, window_bounds = array<i64: 128, 128>}, {transform_indices = @transform_2, window_bounds = array<i64: 16, 128>}]} {
    %c0_i32 = arith.constant 0 : i32
    %0 = arith.cmpi eq, %arg2, %c0_i32 : i32
    %1 = arith.extui %0 : i1 to i32
    %c0_i32_0 = arith.constant 0 : i32
    %2 = arith.cmpi ne, %1, %c0_i32_0 : i32
    scf.if %2 {
      %cst_10 = arith.constant 0.000000e+00 : f32
      %12 = vector.broadcast %cst_10 : f32 to vector<16x128xf32>
      %c0_11 = arith.constant 0 : index
      %c0_12 = arith.constant 0 : index
      %13 = vector.load %arg6[%c0_11, %c0_12] : memref<16x128xf32, #tpu.memory_space<vmem>>, vector<16x128xf32>
      tpu.vector_store %arg6[%c0_11, %c0_12], %12 {strides = array<i32>} : memref<16x128xf32, #tpu.memory_space<vmem>>, vector<16x128xf32>,
    } else {
    }
    %c0 = arith.constant 0 : index
    %c0_1 = arith.constant 0 : index
    %3 = vector.load %arg6[%c0, %c0_1] : memref<16x128xf32, #tpu.memory_space<vmem>>, vector<16x128xf32>
    %c0_2 = arith.constant 0 : index
    %c0_3 = arith.constant 0 : index
    %4 = vector.load %arg3[%c0_2, %c0_3] : memref<16x128xbf16, #tpu.memory_space<vmem>>, vector<16x128xbf16>
    %c0_4 = arith.constant 0 : index
    %c0_5 = arith.constant 0 : index
    %5 = vector.load %arg4[%c0_4, %c0_5] : memref<128x128xbf16, #tpu.memory_space<vmem>>, vector<128x128xbf16>
    %cst = arith.constant dense<0.000000e+00> : vector<16x128xf32>
    %6 = tpu.matmul %4, %5, %cst {dimension_numbers = #tpu.dot_dimension_numbers<[1], [0], [0], [1], [0, 0, 1, 1], [], []>} : vector<16x128xbf16>, vector<128x128xbf16>, vector<16x128xf32> -> vector<16x128xf32>
    %7 = arith.addf %3, %6 : vector<16x128xf32>
    %c0_6 = arith.constant 0 : index
    %c0_7 = arith.constant 0 : index
    %8 = vector.load %arg6[%c0_6, %c0_7] : memref<16x128xf32, #tpu.memory_space<vmem>>, vector<16x128xf32>
    tpu.vector_store %arg6[%c0_6, %c0_7], %7 {strides = array<i32>} : memref<16x128xf32, #tpu.memory_space<vmem>>, vector<16x128xf32>,
    %c0_i32_8 = arith.constant 0 : i32
    %9 = arith.cmpi eq, %arg2, %c0_i32_8 : i32
    %10 = arith.extui %9 : i1 to i32
    %c0_i32_9 = arith.constant 0 : i32
    %11 = arith.cmpi ne, %10, %c0_i32_9 : i32
    scf.if %11 {
      %c0_10 = arith.constant 0 : index
      %c0_11 = arith.constant 0 : index
      %12 = vector.load %arg6[%c0_10, %c0_11] : memref<16x128xf32, #tpu.memory_space<vmem>>, vector<16x128xf32>
      %c0_12 = arith.constant 0 : index
      %c0_13 = arith.constant 0 : index
      %13 = vector.load %arg5[%c0_12, %c0_13] : memref<16x128xf32, #tpu.memory_space<vmem>>, vector<16x128xf32>
      tpu.vector_store %arg5[%c0_12, %c0_13], %12 {strides = array<i32>} : memref<16x128xf32, #tpu.memory_space<vmem>>, vector<16x128xf32>,
    } else {
    }
    return
  }
  func.func @transform_0(%arg0: i32, %arg1: i32, %arg2: i32) -> (i32, i32) {
    %c0_i32 = arith.constant 0 : i32
    return %arg0, %arg2 : i32, i32
  }
  func.func @transform_1(%arg0: i32, %arg1: i32, %arg2: i32) -> (i32, i32) {
    %c0_i32 = arith.constant 0 : i32
    return %arg2, %arg1 : i32, i32
  }
  func.func @transform_2(%arg0: i32, %arg1: i32, %arg2: i32) -> (i32, i32) {
    %c0_i32 = arith.constant 0 : i32
    return %arg0, %arg1 : i32, i32
  }
}

module attributes {stable_mosaic.version = 11 : i64} {
  func.func @_gat_attn_kernel(%arg0: i32, %arg1: i32, %arg2: memref<1xi32, #tpu.memory_space<smem>>, %arg3: memref<2x1x16xf32, #tpu.memory_space<vmem>>, %arg4: memref<2x16x1xf32, #tpu.memory_space<vmem>>, %arg5: memref<16x16xi8, #tpu.memory_space<vmem>>, %arg6: memref<2x16x128xbf16, #tpu.memory_space<vmem>>, %arg7: memref<2x16x128xbf16, #tpu.memory_space<vmem>>, %arg8: memref<2x16x1xf32, #tpu.memory_space<vmem>>, %arg9: memref<2x16x1xf32, #tpu.memory_space<vmem>>, %arg10: memref<2x16x128xf32, #tpu.memory_space<vmem>>) attributes {dimension_semantics = [#tpu.dimension_semantics<parallel>, #tpu.dimension_semantics<arbitrary>], iteration_bounds = array<i64: 1, 1>, scalar_prefetch = 1 : i64, scratch_operands = 3 : i64, tpu.core_type = #tpu.core_type<tc>, window_params = [{transform_indices = @transform_0, window_bounds = array<i64: 2, 1, 16>}, {transform_indices = @transform_1, window_bounds = array<i64: 2, 16, 1>}, {transform_indices = @transform_2, window_bounds = array<i64: 16, 16>}, {transform_indices = @transform_3, window_bounds = array<i64: 2, 16, 128>}, {transform_indices = @transform_4, window_bounds = array<i64: 2, 16, 128>}]} {
    %c0_i32 = arith.constant 0 : i32
    %0 = arith.cmpi eq, %arg1, %c0_i32 : i32
    %1 = arith.extui %0 : i1 to i32
    %c0_i32_0 = arith.constant 0 : i32
    %2 = arith.cmpi ne, %1, %c0_i32_0 : i32
    scf.if %2 {
      %cst = arith.constant -1.000000e+30 : f32
      %13 = vector.broadcast %cst : f32 to vector<2x16x1xf32>
      %c0 = arith.constant 0 : index
      %c0_5 = arith.constant 0 : index
      %c0_6 = arith.constant 0 : index
      %14 = vector.load %arg8[%c0, %c0_5, %c0_6] : memref<2x16x1xf32, #tpu.memory_space<vmem>>, vector<2x16x1xf32>
      tpu.vector_store %arg8[%c0, %c0_5, %c0_6], %13 {strides = array<i32>} : memref<2x16x1xf32, #tpu.memory_space<vmem>>, vector<2x16x1xf32>,
      %cst_7 = arith.constant 0.000000e+00 : f32
      %15 = vector.broadcast %cst_7 : f32 to vector<2x16x1xf32>
      %c0_8 = arith.constant 0 : index
      %c0_9 = arith.constant 0 : index
      %c0_10 = arith.constant 0 : index
      %16 = vector.load %arg9[%c0_8, %c0_9, %c0_10] : memref<2x16x1xf32, #tpu.memory_space<vmem>>, vector<2x16x1xf32>
      tpu.vector_store %arg9[%c0_8, %c0_9, %c0_10], %15 {strides = array<i32>} : memref<2x16x1xf32, #tpu.memory_space<vmem>>, vector<2x16x1xf32>,
      %cst_11 = arith.constant 0.000000e+00 : f32
      %17 = vector.broadcast %cst_11 : f32 to vector<2x16x128xf32>
      %c0_12 = arith.constant 0 : index
      %c0_13 = arith.constant 0 : index
      %c0_14 = arith.constant 0 : index
      %18 = vector.load %arg10[%c0_12, %c0_13, %c0_14] : memref<2x16x128xf32, #tpu.memory_space<vmem>>, vector<2x16x128xf32>
      tpu.vector_store %arg10[%c0_12, %c0_13, %c0_14], %17 {strides = array<i32>} : memref<2x16x128xf32, #tpu.memory_space<vmem>>, vector<2x16x128xf32>,
    } else {
    }
    %c1_i32 = arith.constant 1 : i32
    %3 = arith.muli %arg0, %c1_i32 : i32
    %4 = arith.addi %3, %arg1 : i32
    %5 = arith.index_cast %4 : i32 to index
    %6 = memref.load %arg2[%5] : memref<1xi32, #tpu.memory_space<smem>>
    %c0_i32_1 = arith.constant 0 : i32
    %7 = arith.cmpi sgt, %6, %c0_i32_1 : i32
    %8 = arith.extui %7 : i1 to i32
    %c0_i32_2 = arith.constant 0 : i32
    %9 = arith.cmpi ne, %8, %c0_i32_2 : i32
    scf.if %9 {
      %c0 = arith.constant 0 : index
      %c0_5 = arith.constant 0 : index
      %13 = vector.load %arg5[%c0, %c0_5] : memref<16x16xi8, #tpu.memory_space<vmem>>, vector<16x16xi8>
      %14 = arith.sitofp %13 : vector<16x16xi8> to vector<16x16xf32>
      %cst = arith.constant 0.000000e+00 : f32
      %15 = vector.broadcast %cst : f32 to vector<16x16xf32>
      %16 = arith.cmpf ogt, %14, %15 : vector<16x16xf32>
      %c0_6 = arith.constant 0 : index
      %c0_7 = arith.constant 0 : index
      %c0_8 = arith.constant 0 : index
      %17 = vector.load %arg4[%c0_6, %c0_7, %c0_8] : memref<2x16x1xf32, #tpu.memory_space<vmem>>, vector<1x16x1xf32>
      %18 = vector.shape_cast %17 : vector<1x16x1xf32> to vector<16x1xf32>
      %c0_9 = arith.constant 0 : index
      %c0_10 = arith.constant 0 : index
      %c0_11 = arith.constant 0 : index
      %19 = vector.load %arg3[%c0_9, %c0_10, %c0_11] : memref<2x1x16xf32, #tpu.memory_space<vmem>>, vector<1x1x16xf32>
      %20 = vector.shape_cast %19 : vector<1x1x16xf32> to vector<1x16xf32>
      %21 = vector.broadcast %18 : vector<16x1xf32> to vector<16x16xf32>
      %22 = vector.broadcast %20 : vector<1x16xf32> to vector<16x16xf32>
      %23 = arith.addf %21, %22 : vector<16x16xf32>
      %cst_12 = arith.constant 0.000000e+00 : f32
      %24 = vector.broadcast %cst_12 : f32 to vector<16x16xf32>
      %25 = arith.cmpf ogt, %23, %24 : vector<16x16xf32>
      %cst_13 = arith.constant 2.000000e-01 : f32
      %26 = vector.broadcast %cst_13 : f32 to vector<16x16xf32>
      %27 = arith.mulf %26, %23 : vector<16x16xf32>
      %28 = arith.select %25, %23, %27 : vector<16x16xi1>, vector<16x16xf32>
      %cst_14 = arith.constant -1.000000e+30 : f32
      %29 = vector.broadcast %cst_14 : f32 to vector<16x16xf32>
      %30 = arith.select %16, %28, %29 : vector<16x16xi1>, vector<16x16xf32>
      %c0_15 = arith.constant 0 : index
      %c0_16 = arith.constant 0 : index
      %c0_17 = arith.constant 0 : index
      %31 = vector.load %arg8[%c0_15, %c0_16, %c0_17] : memref<2x16x1xf32, #tpu.memory_space<vmem>>, vector<1x16x1xf32>
      %32 = vector.shape_cast %31 : vector<1x16x1xf32> to vector<16x1xf32>
      %cst_18 = arith.constant dense<0xFF800000> : vector<16xf32>
      %33 = vector.multi_reduction <maximumf>, %30, %cst_18 [1] : vector<16x16xf32> to vector<16xf32>
      %34 = vector.shape_cast %33 : vector<16xf32> to vector<16x1xf32>
      %35 = arith.maximumf %32, %34 : vector<16x1xf32>
      %36 = arith.subf %32, %35 : vector<16x1xf32>
      %37 = math.exp %36 : vector<16x1xf32>
      %38 = vector.broadcast %35 : vector<16x1xf32> to vector<16x16xf32>
      %39 = arith.subf %30, %38 : vector<16x16xf32>
      %40 = math.exp %39 : vector<16x16xf32>
      %cst_19 = arith.constant 0.000000e+00 : f32
      %41 = vector.broadcast %cst_19 : f32 to vector<16x16xf32>
      %42 = arith.select %16, %40, %41 : vector<16x16xi1>, vector<16x16xf32>
      %c0_20 = arith.constant 0 : index
      %c0_21 = arith.constant 0 : index
      %c0_22 = arith.constant 0 : index
      %43 = vector.load %arg9[%c0_20, %c0_21, %c0_22] : memref<2x16x1xf32, #tpu.memory_space<vmem>>, vector<1x16x1xf32>
      %44 = vector.shape_cast %43 : vector<1x16x1xf32> to vector<16x1xf32>
      %45 = arith.mulf %37, %44 : vector<16x1xf32>
      %cst_23 = arith.constant dense<0.000000e+00> : vector<16xf32>
      %46 = vector.multi_reduction <add>, %42, %cst_23 [1] : vector<16x16xf32> to vector<16xf32>
      %47 = vector.shape_cast %46 : vector<16xf32> to vector<16x1xf32>
      %48 = arith.addf %45, %47 : vector<16x1xf32>
      %c0_24 = arith.constant 0 : index
      %c0_25 = arith.constant 0 : index
      %c0_26 = arith.constant 0 : index
      %49 = vector.load %arg9[%c0_24, %c0_25, %c0_26] : memref<2x16x1xf32, #tpu.memory_space<vmem>>, vector<1x16x1xf32>
      %50 = vector.shape_cast %49 : vector<1x16x1xf32> to vector<16x1xf32>
      %51 = vector.shape_cast %48 : vector<16x1xf32> to vector<1x16x1xf32>
      tpu.vector_store %arg9[%c0_24, %c0_25, %c0_26], %51 {strides = array<i32>} : memref<2x16x1xf32, #tpu.memory_space<vmem>>, vector<1x16x1xf32>,
      %c0_27 = arith.constant 0 : index
      %c0_28 = arith.constant 0 : index
      %c0_29 = arith.constant 0 : index
      %52 = vector.load %arg10[%c0_27, %c0_28, %c0_29] : memref<2x16x128xf32, #tpu.memory_space<vmem>>, vector<1x16x128xf32>
      %53 = vector.shape_cast %52 : vector<1x16x128xf32> to vector<16x128xf32>
      %54 = vector.broadcast %37 : vector<16x1xf32> to vector<16x128xf32>
      %55 = arith.mulf %54, %53 : vector<16x128xf32>
      %56 = arith.truncf %42 : vector<16x16xf32> to vector<16x16xbf16>
      %c0_30 = arith.constant 0 : index
      %c0_31 = arith.constant 0 : index
      %c0_32 = arith.constant 0 : index
      %57 = vector.load %arg6[%c0_30, %c0_31, %c0_32] : memref<2x16x128xbf16, #tpu.memory_space<vmem>>, vector<1x16x128xbf16>
      %58 = vector.shape_cast %57 : vector<1x16x128xbf16> to vector<16x128xbf16>
      %cst_33 = arith.constant dense<0.000000e+00> : vector<16x128xf32>
      %59 = tpu.matmul %56, %58, %cst_33 {dimension_numbers = #tpu.dot_dimension_numbers<[1], [0], [0], [1], [0, 0, 1, 1], [], []>} : vector<16x16xbf16>, vector<16x128xbf16>, vector<16x128xf32> -> vector<16x128xf32>
      %60 = arith.addf %55, %59 : vector<16x128xf32>
      %c0_34 = arith.constant 0 : index
      %c0_35 = arith.constant 0 : index
      %c0_36 = arith.constant 0 : index
      %61 = vector.load %arg10[%c0_34, %c0_35, %c0_36] : memref<2x16x128xf32, #tpu.memory_space<vmem>>, vector<1x16x128xf32>
      %62 = vector.shape_cast %61 : vector<1x16x128xf32> to vector<16x128xf32>
      %63 = vector.shape_cast %60 : vector<16x128xf32> to vector<1x16x128xf32>
      tpu.vector_store %arg10[%c0_34, %c0_35, %c0_36], %63 {strides = array<i32>} : memref<2x16x128xf32, #tpu.memory_space<vmem>>, vector<1x16x128xf32>,
      %c0_37 = arith.constant 0 : index
      %c0_38 = arith.constant 0 : index
      %c0_39 = arith.constant 0 : index
      %64 = vector.load %arg8[%c0_37, %c0_38, %c0_39] : memref<2x16x1xf32, #tpu.memory_space<vmem>>, vector<1x16x1xf32>
      %65 = vector.shape_cast %64 : vector<1x16x1xf32> to vector<16x1xf32>
      %66 = vector.shape_cast %35 : vector<16x1xf32> to vector<1x16x1xf32>
      tpu.vector_store %arg8[%c0_37, %c0_38, %c0_39], %66 {strides = array<i32>} : memref<2x16x1xf32, #tpu.memory_space<vmem>>, vector<1x16x1xf32>,
      %c1 = arith.constant 1 : index
      %c0_40 = arith.constant 0 : index
      %c0_41 = arith.constant 0 : index
      %67 = vector.load %arg4[%c1, %c0_40, %c0_41] : memref<2x16x1xf32, #tpu.memory_space<vmem>>, vector<1x16x1xf32>
      %68 = vector.shape_cast %67 : vector<1x16x1xf32> to vector<16x1xf32>
      %c1_42 = arith.constant 1 : index
      %c0_43 = arith.constant 0 : index
      %c0_44 = arith.constant 0 : index
      %69 = vector.load %arg3[%c1_42, %c0_43, %c0_44] : memref<2x1x16xf32, #tpu.memory_space<vmem>>, vector<1x1x16xf32>
      %70 = vector.shape_cast %69 : vector<1x1x16xf32> to vector<1x16xf32>
      %71 = vector.broadcast %68 : vector<16x1xf32> to vector<16x16xf32>
      %72 = vector.broadcast %70 : vector<1x16xf32> to vector<16x16xf32>
      %73 = arith.addf %71, %72 : vector<16x16xf32>
      %cst_45 = arith.constant 0.000000e+00 : f32
      %74 = vector.broadcast %cst_45 : f32 to vector<16x16xf32>
      %75 = arith.cmpf ogt, %73, %74 : vector<16x16xf32>
      %cst_46 = arith.constant 2.000000e-01 : f32
      %76 = vector.broadcast %cst_46 : f32 to vector<16x16xf32>
      %77 = arith.mulf %76, %73 : vector<16x16xf32>
      %78 = arith.select %75, %73, %77 : vector<16x16xi1>, vector<16x16xf32>
      %cst_47 = arith.constant -1.000000e+30 : f32
      %79 = vector.broadcast %cst_47 : f32 to vector<16x16xf32>
      %80 = arith.select %16, %78, %79 : vector<16x16xi1>, vector<16x16xf32>
      %c1_48 = arith.constant 1 : index
      %c0_49 = arith.constant 0 : index
      %c0_50 = arith.constant 0 : index
      %81 = vector.load %arg8[%c1_48, %c0_49, %c0_50] : memref<2x16x1xf32, #tpu.memory_space<vmem>>, vector<1x16x1xf32>
      %82 = vector.shape_cast %81 : vector<1x16x1xf32> to vector<16x1xf32>
      %cst_51 = arith.constant dense<0xFF800000> : vector<16xf32>
      %83 = vector.multi_reduction <maximumf>, %80, %cst_51 [1] : vector<16x16xf32> to vector<16xf32>
      %84 = vector.shape_cast %83 : vector<16xf32> to vector<16x1xf32>
      %85 = arith.maximumf %82, %84 : vector<16x1xf32>
      %86 = arith.subf %82, %85 : vector<16x1xf32>
      %87 = math.exp %86 : vector<16x1xf32>
      %88 = vector.broadcast %85 : vector<16x1xf32> to vector<16x16xf32>
      %89 = arith.subf %80, %88 : vector<16x16xf32>
      %90 = math.exp %89 : vector<16x16xf32>
      %cst_52 = arith.constant 0.000000e+00 : f32
      %91 = vector.broadcast %cst_52 : f32 to vector<16x16xf32>
      %92 = arith.select %16, %90, %91 : vector<16x16xi1>, vector<16x16xf32>
      %c1_53 = arith.constant 1 : index
      %c0_54 = arith.constant 0 : index
      %c0_55 = arith.constant 0 : index
      %93 = vector.load %arg9[%c1_53, %c0_54, %c0_55] : memref<2x16x1xf32, #tpu.memory_space<vmem>>, vector<1x16x1xf32>
      %94 = vector.shape_cast %93 : vector<1x16x1xf32> to vector<16x1xf32>
      %95 = arith.mulf %87, %94 : vector<16x1xf32>
      %cst_56 = arith.constant dense<0.000000e+00> : vector<16xf32>
      %96 = vector.multi_reduction <add>, %92, %cst_56 [1] : vector<16x16xf32> to vector<16xf32>
      %97 = vector.shape_cast %96 : vector<16xf32> to vector<16x1xf32>
      %98 = arith.addf %95, %97 : vector<16x1xf32>
      %c1_57 = arith.constant 1 : index
      %c0_58 = arith.constant 0 : index
      %c0_59 = arith.constant 0 : index
      %99 = vector.load %arg9[%c1_57, %c0_58, %c0_59] : memref<2x16x1xf32, #tpu.memory_space<vmem>>, vector<1x16x1xf32>
      %100 = vector.shape_cast %99 : vector<1x16x1xf32> to vector<16x1xf32>
      %101 = vector.shape_cast %98 : vector<16x1xf32> to vector<1x16x1xf32>
      tpu.vector_store %arg9[%c1_57, %c0_58, %c0_59], %101 {strides = array<i32>} : memref<2x16x1xf32, #tpu.memory_space<vmem>>, vector<1x16x1xf32>,
      %c1_60 = arith.constant 1 : index
      %c0_61 = arith.constant 0 : index
      %c0_62 = arith.constant 0 : index
      %102 = vector.load %arg10[%c1_60, %c0_61, %c0_62] : memref<2x16x128xf32, #tpu.memory_space<vmem>>, vector<1x16x128xf32>
      %103 = vector.shape_cast %102 : vector<1x16x128xf32> to vector<16x128xf32>
      %104 = vector.broadcast %87 : vector<16x1xf32> to vector<16x128xf32>
      %105 = arith.mulf %104, %103 : vector<16x128xf32>
      %106 = arith.truncf %92 : vector<16x16xf32> to vector<16x16xbf16>
      %c1_63 = arith.constant 1 : index
      %c0_64 = arith.constant 0 : index
      %c0_65 = arith.constant 0 : index
      %107 = vector.load %arg6[%c1_63, %c0_64, %c0_65] : memref<2x16x128xbf16, #tpu.memory_space<vmem>>, vector<1x16x128xbf16>
      %108 = vector.shape_cast %107 : vector<1x16x128xbf16> to vector<16x128xbf16>
      %cst_66 = arith.constant dense<0.000000e+00> : vector<16x128xf32>
      %109 = tpu.matmul %106, %108, %cst_66 {dimension_numbers = #tpu.dot_dimension_numbers<[1], [0], [0], [1], [0, 0, 1, 1], [], []>} : vector<16x16xbf16>, vector<16x128xbf16>, vector<16x128xf32> -> vector<16x128xf32>
      %110 = arith.addf %105, %109 : vector<16x128xf32>
      %c1_67 = arith.constant 1 : index
      %c0_68 = arith.constant 0 : index
      %c0_69 = arith.constant 0 : index
      %111 = vector.load %arg10[%c1_67, %c0_68, %c0_69] : memref<2x16x128xf32, #tpu.memory_space<vmem>>, vector<1x16x128xf32>
      %112 = vector.shape_cast %111 : vector<1x16x128xf32> to vector<16x128xf32>
      %113 = vector.shape_cast %110 : vector<16x128xf32> to vector<1x16x128xf32>
      tpu.vector_store %arg10[%c1_67, %c0_68, %c0_69], %113 {strides = array<i32>} : memref<2x16x128xf32, #tpu.memory_space<vmem>>, vector<1x16x128xf32>,
      %c1_70 = arith.constant 1 : index
      %c0_71 = arith.constant 0 : index
      %c0_72 = arith.constant 0 : index
      %114 = vector.load %arg8[%c1_70, %c0_71, %c0_72] : memref<2x16x1xf32, #tpu.memory_space<vmem>>, vector<1x16x1xf32>
      %115 = vector.shape_cast %114 : vector<1x16x1xf32> to vector<16x1xf32>
      %116 = vector.shape_cast %85 : vector<16x1xf32> to vector<1x16x1xf32>
      tpu.vector_store %arg8[%c1_70, %c0_71, %c0_72], %116 {strides = array<i32>} : memref<2x16x1xf32, #tpu.memory_space<vmem>>, vector<1x16x1xf32>,
    } else {
    }
    %c0_i32_3 = arith.constant 0 : i32
    %10 = arith.cmpi eq, %arg1, %c0_i32_3 : i32
    %11 = arith.extui %10 : i1 to i32
    %c0_i32_4 = arith.constant 0 : i32
    %12 = arith.cmpi ne, %11, %c0_i32_4 : i32
    scf.if %12 {
      %c0 = arith.constant 0 : index
      %c0_5 = arith.constant 0 : index
      %c0_6 = arith.constant 0 : index
      %13 = vector.load %arg9[%c0, %c0_5, %c0_6] : memref<2x16x1xf32, #tpu.memory_space<vmem>>, vector<2x16x1xf32>
      %cst = arith.constant 9.99999968E-21 : f32
      %14 = vector.broadcast %cst : f32 to vector<2x16x1xf32>
      %15 = arith.maximumf %13, %14 : vector<2x16x1xf32>
      %16 = tpu.reciprocal %15 {approx = true} : vector<2x16x1xf32> -> vector<2x16x1xf32>
      %c0_7 = arith.constant 0 : index
      %c0_8 = arith.constant 0 : index
      %c0_9 = arith.constant 0 : index
      %17 = vector.load %arg10[%c0_7, %c0_8, %c0_9] : memref<2x16x128xf32, #tpu.memory_space<vmem>>, vector<2x16x128xf32>
      %18 = vector.broadcast %16 : vector<2x16x1xf32> to vector<2x16x128xf32>
      %19 = arith.mulf %17, %18 : vector<2x16x128xf32>
      %20 = arith.truncf %19 : vector<2x16x128xf32> to vector<2x16x128xbf16>
      %c0_10 = arith.constant 0 : index
      %c0_11 = arith.constant 0 : index
      %c0_12 = arith.constant 0 : index
      %21 = vector.load %arg7[%c0_10, %c0_11, %c0_12] : memref<2x16x128xbf16, #tpu.memory_space<vmem>>, vector<2x16x128xbf16>
      tpu.vector_store %arg7[%c0_10, %c0_11, %c0_12], %20 {strides = array<i32>} : memref<2x16x128xbf16, #tpu.memory_space<vmem>>, vector<2x16x128xbf16>,
    } else {
    }
    return
  }
  func.func @transform_0(%arg0: i32, %arg1: i32, %arg2: memref<1xi32, #tpu.memory_space<smem>>) -> (i32, i32, i32) {
    %c0_i32 = arith.constant 0 : i32
    %c0_i32_0 = arith.constant 0 : i32
    %c0_i32_1 = arith.constant 0 : i32
    return %c0_i32, %c0_i32_0, %arg1 : i32, i32, i32
  }
  func.func @transform_1(%arg0: i32, %arg1: i32, %arg2: memref<1xi32, #tpu.memory_space<smem>>) -> (i32, i32, i32) {
    %c0_i32 = arith.constant 0 : i32
    %c0_i32_0 = arith.constant 0 : i32
    %c0_i32_1 = arith.constant 0 : i32
    return %c0_i32, %arg0, %c0_i32_0 : i32, i32, i32
  }
  func.func @transform_2(%arg0: i32, %arg1: i32, %arg2: memref<1xi32, #tpu.memory_space<smem>>) -> (i32, i32) {
    %c0_i32 = arith.constant 0 : i32
    return %arg0, %arg1 : i32, i32
  }
  func.func @transform_3(%arg0: i32, %arg1: i32, %arg2: memref<1xi32, #tpu.memory_space<smem>>) -> (i32, i32, i32) {
    %c0_i32 = arith.constant 0 : i32
    %c0_i32_0 = arith.constant 0 : i32
    %c0_i32_1 = arith.constant 0 : i32
    return %c0_i32, %arg1, %c0_i32_0 : i32, i32, i32
  }
  func.func @transform_4(%arg0: i32, %arg1: i32, %arg2: memref<1xi32, #tpu.memory_space<smem>>) -> (i32, i32, i32) {
    %c0_i32 = arith.constant 0 : i32
    %c0_i32_0 = arith.constant 0 : i32
    %c0_i32_1 = arith.constant 0 : i32
    return %c0_i32, %arg0, %c0_i32_0 : i32, i32, i32
  }
}

module attributes {stable_mosaic.version = 11 : i64} {
  func.func @_matmul_kernel(%arg0: i32, %arg1: i32, %arg2: i32, %arg3: memref<16x128xbf16, #tpu.memory_space<vmem>>, %arg4: memref<128x128xbf16, #tpu.memory_space<vmem>>, %arg5: memref<16x128xf32, #tpu.memory_space<vmem>>, %arg6: memref<16x128xf32, #tpu.memory_space<vmem>>) attributes {dimension_semantics = [#tpu.dimension_semantics<parallel>, #tpu.dimension_semantics<parallel>, #tpu.dimension_semantics<arbitrary>], iteration_bounds = array<i64: 1, 1, 1>, scalar_prefetch = 0 : i64, scratch_operands = 1 : i64, tpu.core_type = #tpu.core_type<tc>, window_params = [{transform_indices = @transform_0, window_bounds = array<i64: 16, 128>}, {transform_indices = @transform_1, window_bounds = array<i64: 128, 128>}, {transform_indices = @transform_2, window_bounds = array<i64: 16, 128>}]} {
    %c0_i32 = arith.constant 0 : i32
    %0 = arith.cmpi eq, %arg2, %c0_i32 : i32
    %1 = arith.extui %0 : i1 to i32
    %c0_i32_0 = arith.constant 0 : i32
    %2 = arith.cmpi ne, %1, %c0_i32_0 : i32
    scf.if %2 {
      %cst_10 = arith.constant 0.000000e+00 : f32
      %12 = vector.broadcast %cst_10 : f32 to vector<16x128xf32>
      %c0_11 = arith.constant 0 : index
      %c0_12 = arith.constant 0 : index
      %13 = vector.load %arg6[%c0_11, %c0_12] : memref<16x128xf32, #tpu.memory_space<vmem>>, vector<16x128xf32>
      tpu.vector_store %arg6[%c0_11, %c0_12], %12 {strides = array<i32>} : memref<16x128xf32, #tpu.memory_space<vmem>>, vector<16x128xf32>,
    } else {
    }
    %c0 = arith.constant 0 : index
    %c0_1 = arith.constant 0 : index
    %3 = vector.load %arg6[%c0, %c0_1] : memref<16x128xf32, #tpu.memory_space<vmem>>, vector<16x128xf32>
    %c0_2 = arith.constant 0 : index
    %c0_3 = arith.constant 0 : index
    %4 = vector.load %arg3[%c0_2, %c0_3] : memref<16x128xbf16, #tpu.memory_space<vmem>>, vector<16x128xbf16>
    %c0_4 = arith.constant 0 : index
    %c0_5 = arith.constant 0 : index
    %5 = vector.load %arg4[%c0_4, %c0_5] : memref<128x128xbf16, #tpu.memory_space<vmem>>, vector<128x128xbf16>
    %cst = arith.constant dense<0.000000e+00> : vector<16x128xf32>
    %6 = tpu.matmul %4, %5, %cst {dimension_numbers = #tpu.dot_dimension_numbers<[1], [0], [0], [1], [0, 0, 1, 1], [], []>} : vector<16x128xbf16>, vector<128x128xbf16>, vector<16x128xf32> -> vector<16x128xf32>
    %7 = arith.addf %3, %6 : vector<16x128xf32>
    %c0_6 = arith.constant 0 : index
    %c0_7 = arith.constant 0 : index
    %8 = vector.load %arg6[%c0_6, %c0_7] : memref<16x128xf32, #tpu.memory_space<vmem>>, vector<16x128xf32>
    tpu.vector_store %arg6[%c0_6, %c0_7], %7 {strides = array<i32>} : memref<16x128xf32, #tpu.memory_space<vmem>>, vector<16x128xf32>,
    %c0_i32_8 = arith.constant 0 : i32
    %9 = arith.cmpi eq, %arg2, %c0_i32_8 : i32
    %10 = arith.extui %9 : i1 to i32
    %c0_i32_9 = arith.constant 0 : i32
    %11 = arith.cmpi ne, %10, %c0_i32_9 : i32
    scf.if %11 {
      %c0_10 = arith.constant 0 : index
      %c0_11 = arith.constant 0 : index
      %12 = vector.load %arg6[%c0_10, %c0_11] : memref<16x128xf32, #tpu.memory_space<vmem>>, vector<16x128xf32>
      %c0_12 = arith.constant 0 : index
      %c0_13 = arith.constant 0 : index
      %13 = vector.load %arg5[%c0_12, %c0_13] : memref<16x128xf32, #tpu.memory_space<vmem>>, vector<16x128xf32>
      tpu.vector_store %arg5[%c0_12, %c0_13], %12 {strides = array<i32>} : memref<16x128xf32, #tpu.memory_space<vmem>>, vector<16x128xf32>,
    } else {
    }
    return
  }
  func.func @transform_0(%arg0: i32, %arg1: i32, %arg2: i32) -> (i32, i32) {
    %c0_i32 = arith.constant 0 : i32
    return %arg0, %arg2 : i32, i32
  }
  func.func @transform_1(%arg0: i32, %arg1: i32, %arg2: i32) -> (i32, i32) {
    %c0_i32 = arith.constant 0 : i32
    return %arg2, %arg1 : i32, i32
  }
  func.func @transform_2(%arg0: i32, %arg1: i32, %arg2: i32) -> (i32, i32) {
    %c0_i32 = arith.constant 0 : i32
    return %arg0, %arg1 : i32, i32
  }
}

module attributes {stable_mosaic.version = 11 : i64} {
  func.func @_gat_attn_kernel(%arg0: i32, %arg1: i32, %arg2: memref<1xi32, #tpu.memory_space<smem>>, %arg3: memref<1x1x16xf32, #tpu.memory_space<vmem>>, %arg4: memref<1x16x1xf32, #tpu.memory_space<vmem>>, %arg5: memref<16x16xi8, #tpu.memory_space<vmem>>, %arg6: memref<2x16x128xbf16, #tpu.memory_space<vmem>>, %arg7: memref<2x16x128xbf16, #tpu.memory_space<vmem>>, %arg8: memref<2x16x1xf32, #tpu.memory_space<vmem>>, %arg9: memref<2x16x1xf32, #tpu.memory_space<vmem>>, %arg10: memref<2x16x128xf32, #tpu.memory_space<vmem>>) attributes {dimension_semantics = [#tpu.dimension_semantics<parallel>, #tpu.dimension_semantics<arbitrary>], iteration_bounds = array<i64: 1, 1>, scalar_prefetch = 1 : i64, scratch_operands = 3 : i64, tpu.core_type = #tpu.core_type<tc>, window_params = [{transform_indices = @transform_0, window_bounds = array<i64: 1, 1, 16>}, {transform_indices = @transform_1, window_bounds = array<i64: 1, 16, 1>}, {transform_indices = @transform_2, window_bounds = array<i64: 16, 16>}, {transform_indices = @transform_3, window_bounds = array<i64: 2, 16, 128>}, {transform_indices = @transform_4, window_bounds = array<i64: 2, 16, 128>}]} {
    %c0_i32 = arith.constant 0 : i32
    %0 = arith.cmpi eq, %arg1, %c0_i32 : i32
    %1 = arith.extui %0 : i1 to i32
    %c0_i32_0 = arith.constant 0 : i32
    %2 = arith.cmpi ne, %1, %c0_i32_0 : i32
    scf.if %2 {
      %cst = arith.constant -1.000000e+30 : f32
      %13 = vector.broadcast %cst : f32 to vector<2x16x1xf32>
      %c0 = arith.constant 0 : index
      %c0_5 = arith.constant 0 : index
      %c0_6 = arith.constant 0 : index
      %14 = vector.load %arg8[%c0, %c0_5, %c0_6] : memref<2x16x1xf32, #tpu.memory_space<vmem>>, vector<2x16x1xf32>
      tpu.vector_store %arg8[%c0, %c0_5, %c0_6], %13 {strides = array<i32>} : memref<2x16x1xf32, #tpu.memory_space<vmem>>, vector<2x16x1xf32>,
      %cst_7 = arith.constant 0.000000e+00 : f32
      %15 = vector.broadcast %cst_7 : f32 to vector<2x16x1xf32>
      %c0_8 = arith.constant 0 : index
      %c0_9 = arith.constant 0 : index
      %c0_10 = arith.constant 0 : index
      %16 = vector.load %arg9[%c0_8, %c0_9, %c0_10] : memref<2x16x1xf32, #tpu.memory_space<vmem>>, vector<2x16x1xf32>
      tpu.vector_store %arg9[%c0_8, %c0_9, %c0_10], %15 {strides = array<i32>} : memref<2x16x1xf32, #tpu.memory_space<vmem>>, vector<2x16x1xf32>,
      %cst_11 = arith.constant 0.000000e+00 : f32
      %17 = vector.broadcast %cst_11 : f32 to vector<2x16x128xf32>
      %c0_12 = arith.constant 0 : index
      %c0_13 = arith.constant 0 : index
      %c0_14 = arith.constant 0 : index
      %18 = vector.load %arg10[%c0_12, %c0_13, %c0_14] : memref<2x16x128xf32, #tpu.memory_space<vmem>>, vector<2x16x128xf32>
      tpu.vector_store %arg10[%c0_12, %c0_13, %c0_14], %17 {strides = array<i32>} : memref<2x16x128xf32, #tpu.memory_space<vmem>>, vector<2x16x128xf32>,
    } else {
    }
    %c1_i32 = arith.constant 1 : i32
    %3 = arith.muli %arg0, %c1_i32 : i32
    %4 = arith.addi %3, %arg1 : i32
    %5 = arith.index_cast %4 : i32 to index
    %6 = memref.load %arg2[%5] : memref<1xi32, #tpu.memory_space<smem>>
    %c0_i32_1 = arith.constant 0 : i32
    %7 = arith.cmpi sgt, %6, %c0_i32_1 : i32
    %8 = arith.extui %7 : i1 to i32
    %c0_i32_2 = arith.constant 0 : i32
    %9 = arith.cmpi ne, %8, %c0_i32_2 : i32
    scf.if %9 {
      %c0 = arith.constant 0 : index
      %c0_5 = arith.constant 0 : index
      %13 = vector.load %arg5[%c0, %c0_5] : memref<16x16xi8, #tpu.memory_space<vmem>>, vector<16x16xi8>
      %14 = arith.sitofp %13 : vector<16x16xi8> to vector<16x16xf32>
      %cst = arith.constant 0.000000e+00 : f32
      %15 = vector.broadcast %cst : f32 to vector<16x16xf32>
      %16 = arith.cmpf ogt, %14, %15 : vector<16x16xf32>
      %c0_6 = arith.constant 0 : index
      %c0_7 = arith.constant 0 : index
      %c0_8 = arith.constant 0 : index
      %17 = vector.load %arg4[%c0_6, %c0_7, %c0_8] : memref<1x16x1xf32, #tpu.memory_space<vmem>>, vector<1x16x1xf32>
      %18 = vector.shape_cast %17 : vector<1x16x1xf32> to vector<16x1xf32>
      %c0_9 = arith.constant 0 : index
      %c0_10 = arith.constant 0 : index
      %c0_11 = arith.constant 0 : index
      %19 = vector.load %arg3[%c0_9, %c0_10, %c0_11] : memref<1x1x16xf32, #tpu.memory_space<vmem>>, vector<1x1x16xf32>
      %20 = vector.shape_cast %19 : vector<1x1x16xf32> to vector<1x16xf32>
      %21 = vector.broadcast %18 : vector<16x1xf32> to vector<16x16xf32>
      %22 = vector.broadcast %20 : vector<1x16xf32> to vector<16x16xf32>
      %23 = arith.addf %21, %22 : vector<16x16xf32>
      %cst_12 = arith.constant 0.000000e+00 : f32
      %24 = vector.broadcast %cst_12 : f32 to vector<16x16xf32>
      %25 = arith.cmpf ogt, %23, %24 : vector<16x16xf32>
      %cst_13 = arith.constant 2.000000e-01 : f32
      %26 = vector.broadcast %cst_13 : f32 to vector<16x16xf32>
      %27 = arith.mulf %26, %23 : vector<16x16xf32>
      %28 = arith.select %25, %23, %27 : vector<16x16xi1>, vector<16x16xf32>
      %cst_14 = arith.constant -1.000000e+30 : f32
      %29 = vector.broadcast %cst_14 : f32 to vector<16x16xf32>
      %30 = arith.select %16, %28, %29 : vector<16x16xi1>, vector<16x16xf32>
      %c0_15 = arith.constant 0 : index
      %c0_16 = arith.constant 0 : index
      %c0_17 = arith.constant 0 : index
      %31 = vector.load %arg8[%c0_15, %c0_16, %c0_17] : memref<2x16x1xf32, #tpu.memory_space<vmem>>, vector<1x16x1xf32>
      %32 = vector.shape_cast %31 : vector<1x16x1xf32> to vector<16x1xf32>
      %cst_18 = arith.constant dense<0xFF800000> : vector<16xf32>
      %33 = vector.multi_reduction <maximumf>, %30, %cst_18 [1] : vector<16x16xf32> to vector<16xf32>
      %34 = vector.shape_cast %33 : vector<16xf32> to vector<16x1xf32>
      %35 = arith.maximumf %32, %34 : vector<16x1xf32>
      %36 = arith.subf %32, %35 : vector<16x1xf32>
      %37 = math.exp %36 : vector<16x1xf32>
      %38 = vector.broadcast %35 : vector<16x1xf32> to vector<16x16xf32>
      %39 = arith.subf %30, %38 : vector<16x16xf32>
      %40 = math.exp %39 : vector<16x16xf32>
      %cst_19 = arith.constant 0.000000e+00 : f32
      %41 = vector.broadcast %cst_19 : f32 to vector<16x16xf32>
      %42 = arith.select %16, %40, %41 : vector<16x16xi1>, vector<16x16xf32>
      %c0_20 = arith.constant 0 : index
      %c0_21 = arith.constant 0 : index
      %c0_22 = arith.constant 0 : index
      %43 = vector.load %arg9[%c0_20, %c0_21, %c0_22] : memref<2x16x1xf32, #tpu.memory_space<vmem>>, vector<1x16x1xf32>
      %44 = vector.shape_cast %43 : vector<1x16x1xf32> to vector<16x1xf32>
      %45 = arith.mulf %37, %44 : vector<16x1xf32>
      %cst_23 = arith.constant dense<0.000000e+00> : vector<16xf32>
      %46 = vector.multi_reduction <add>, %42, %cst_23 [1] : vector<16x16xf32> to vector<16xf32>
      %47 = vector.shape_cast %46 : vector<16xf32> to vector<16x1xf32>
      %48 = arith.addf %45, %47 : vector<16x1xf32>
      %c0_24 = arith.constant 0 : index
      %c0_25 = arith.constant 0 : index
      %c0_26 = arith.constant 0 : index
      %49 = vector.load %arg9[%c0_24, %c0_25, %c0_26] : memref<2x16x1xf32, #tpu.memory_space<vmem>>, vector<1x16x1xf32>
      %50 = vector.shape_cast %49 : vector<1x16x1xf32> to vector<16x1xf32>
      %51 = vector.shape_cast %48 : vector<16x1xf32> to vector<1x16x1xf32>
      tpu.vector_store %arg9[%c0_24, %c0_25, %c0_26], %51 {strides = array<i32>} : memref<2x16x1xf32, #tpu.memory_space<vmem>>, vector<1x16x1xf32>,
      %c0_27 = arith.constant 0 : index
      %c0_28 = arith.constant 0 : index
      %c0_29 = arith.constant 0 : index
      %52 = vector.load %arg10[%c0_27, %c0_28, %c0_29] : memref<2x16x128xf32, #tpu.memory_space<vmem>>, vector<1x16x128xf32>
      %53 = vector.shape_cast %52 : vector<1x16x128xf32> to vector<16x128xf32>
      %54 = vector.broadcast %37 : vector<16x1xf32> to vector<16x128xf32>
      %55 = arith.mulf %54, %53 : vector<16x128xf32>
      %56 = arith.truncf %42 : vector<16x16xf32> to vector<16x16xbf16>
      %c0_30 = arith.constant 0 : index
      %c0_31 = arith.constant 0 : index
      %c0_32 = arith.constant 0 : index
      %57 = vector.load %arg6[%c0_30, %c0_31, %c0_32] : memref<2x16x128xbf16, #tpu.memory_space<vmem>>, vector<1x16x128xbf16>
      %58 = vector.shape_cast %57 : vector<1x16x128xbf16> to vector<16x128xbf16>
      %cst_33 = arith.constant dense<0.000000e+00> : vector<16x128xf32>
      %59 = tpu.matmul %56, %58, %cst_33 {dimension_numbers = #tpu.dot_dimension_numbers<[1], [0], [0], [1], [0, 0, 1, 1], [], []>} : vector<16x16xbf16>, vector<16x128xbf16>, vector<16x128xf32> -> vector<16x128xf32>
      %60 = arith.addf %55, %59 : vector<16x128xf32>
      %c0_34 = arith.constant 0 : index
      %c0_35 = arith.constant 0 : index
      %c0_36 = arith.constant 0 : index
      %61 = vector.load %arg10[%c0_34, %c0_35, %c0_36] : memref<2x16x128xf32, #tpu.memory_space<vmem>>, vector<1x16x128xf32>
      %62 = vector.shape_cast %61 : vector<1x16x128xf32> to vector<16x128xf32>
      %63 = vector.shape_cast %60 : vector<16x128xf32> to vector<1x16x128xf32>
      tpu.vector_store %arg10[%c0_34, %c0_35, %c0_36], %63 {strides = array<i32>} : memref<2x16x128xf32, #tpu.memory_space<vmem>>, vector<1x16x128xf32>,
      %c0_37 = arith.constant 0 : index
      %c0_38 = arith.constant 0 : index
      %c0_39 = arith.constant 0 : index
      %64 = vector.load %arg8[%c0_37, %c0_38, %c0_39] : memref<2x16x1xf32, #tpu.memory_space<vmem>>, vector<1x16x1xf32>
      %65 = vector.shape_cast %64 : vector<1x16x1xf32> to vector<16x1xf32>
      %66 = vector.shape_cast %35 : vector<16x1xf32> to vector<1x16x1xf32>
      tpu.vector_store %arg8[%c0_37, %c0_38, %c0_39], %66 {strides = array<i32>} : memref<2x16x1xf32, #tpu.memory_space<vmem>>, vector<1x16x1xf32>,
      %c0_40 = arith.constant 0 : index
      %c0_41 = arith.constant 0 : index
      %c0_42 = arith.constant 0 : index
      %67 = vector.load %arg4[%c0_40, %c0_41, %c0_42] : memref<1x16x1xf32, #tpu.memory_space<vmem>>, vector<1x16x1xf32>
      %68 = vector.shape_cast %67 : vector<1x16x1xf32> to vector<16x1xf32>
      %c0_43 = arith.constant 0 : index
      %c0_44 = arith.constant 0 : index
      %c0_45 = arith.constant 0 : index
      %69 = vector.load %arg3[%c0_43, %c0_44, %c0_45] : memref<1x1x16xf32, #tpu.memory_space<vmem>>, vector<1x1x16xf32>
      %70 = vector.shape_cast %69 : vector<1x1x16xf32> to vector<1x16xf32>
      %71 = vector.broadcast %68 : vector<16x1xf32> to vector<16x16xf32>
      %72 = vector.broadcast %70 : vector<1x16xf32> to vector<16x16xf32>
      %73 = arith.addf %71, %72 : vector<16x16xf32>
      %cst_46 = arith.constant 0.000000e+00 : f32
      %74 = vector.broadcast %cst_46 : f32 to vector<16x16xf32>
      %75 = arith.cmpf ogt, %73, %74 : vector<16x16xf32>
      %cst_47 = arith.constant 2.000000e-01 : f32
      %76 = vector.broadcast %cst_47 : f32 to vector<16x16xf32>
      %77 = arith.mulf %76, %73 : vector<16x16xf32>
      %78 = arith.select %75, %73, %77 : vector<16x16xi1>, vector<16x16xf32>
      %cst_48 = arith.constant -1.000000e+30 : f32
      %79 = vector.broadcast %cst_48 : f32 to vector<16x16xf32>
      %80 = arith.select %16, %78, %79 : vector<16x16xi1>, vector<16x16xf32>
      %c1 = arith.constant 1 : index
      %c0_49 = arith.constant 0 : index
      %c0_50 = arith.constant 0 : index
      %81 = vector.load %arg8[%c1, %c0_49, %c0_50] : memref<2x16x1xf32, #tpu.memory_space<vmem>>, vector<1x16x1xf32>
      %82 = vector.shape_cast %81 : vector<1x16x1xf32> to vector<16x1xf32>
      %cst_51 = arith.constant dense<0xFF800000> : vector<16xf32>
      %83 = vector.multi_reduction <maximumf>, %80, %cst_51 [1] : vector<16x16xf32> to vector<16xf32>
      %84 = vector.shape_cast %83 : vector<16xf32> to vector<16x1xf32>
      %85 = arith.maximumf %82, %84 : vector<16x1xf32>
      %86 = arith.subf %82, %85 : vector<16x1xf32>
      %87 = math.exp %86 : vector<16x1xf32>
      %88 = vector.broadcast %85 : vector<16x1xf32> to vector<16x16xf32>
      %89 = arith.subf %80, %88 : vector<16x16xf32>
      %90 = math.exp %89 : vector<16x16xf32>
      %cst_52 = arith.constant 0.000000e+00 : f32
      %91 = vector.broadcast %cst_52 : f32 to vector<16x16xf32>
      %92 = arith.select %16, %90, %91 : vector<16x16xi1>, vector<16x16xf32>
      %c1_53 = arith.constant 1 : index
      %c0_54 = arith.constant 0 : index
      %c0_55 = arith.constant 0 : index
      %93 = vector.load %arg9[%c1_53, %c0_54, %c0_55] : memref<2x16x1xf32, #tpu.memory_space<vmem>>, vector<1x16x1xf32>
      %94 = vector.shape_cast %93 : vector<1x16x1xf32> to vector<16x1xf32>
      %95 = arith.mulf %87, %94 : vector<16x1xf32>
      %cst_56 = arith.constant dense<0.000000e+00> : vector<16xf32>
      %96 = vector.multi_reduction <add>, %92, %cst_56 [1] : vector<16x16xf32> to vector<16xf32>
      %97 = vector.shape_cast %96 : vector<16xf32> to vector<16x1xf32>
      %98 = arith.addf %95, %97 : vector<16x1xf32>
      %c1_57 = arith.constant 1 : index
      %c0_58 = arith.constant 0 : index
      %c0_59 = arith.constant 0 : index
      %99 = vector.load %arg9[%c1_57, %c0_58, %c0_59] : memref<2x16x1xf32, #tpu.memory_space<vmem>>, vector<1x16x1xf32>
      %100 = vector.shape_cast %99 : vector<1x16x1xf32> to vector<16x1xf32>
      %101 = vector.shape_cast %98 : vector<16x1xf32> to vector<1x16x1xf32>
      tpu.vector_store %arg9[%c1_57, %c0_58, %c0_59], %101 {strides = array<i32>} : memref<2x16x1xf32, #tpu.memory_space<vmem>>, vector<1x16x1xf32>,
      %c1_60 = arith.constant 1 : index
      %c0_61 = arith.constant 0 : index
      %c0_62 = arith.constant 0 : index
      %102 = vector.load %arg10[%c1_60, %c0_61, %c0_62] : memref<2x16x128xf32, #tpu.memory_space<vmem>>, vector<1x16x128xf32>
      %103 = vector.shape_cast %102 : vector<1x16x128xf32> to vector<16x128xf32>
      %104 = vector.broadcast %87 : vector<16x1xf32> to vector<16x128xf32>
      %105 = arith.mulf %104, %103 : vector<16x128xf32>
      %106 = arith.truncf %92 : vector<16x16xf32> to vector<16x16xbf16>
      %c1_63 = arith.constant 1 : index
      %c0_64 = arith.constant 0 : index
      %c0_65 = arith.constant 0 : index
      %107 = vector.load %arg6[%c1_63, %c0_64, %c0_65] : memref<2x16x128xbf16, #tpu.memory_space<vmem>>, vector<1x16x128xbf16>
      %108 = vector.shape_cast %107 : vector<1x16x128xbf16> to vector<16x128xbf16>
      %cst_66 = arith.constant dense<0.000000e+00> : vector<16x128xf32>
      %109 = tpu.matmul %106, %108, %cst_66 {dimension_numbers = #tpu.dot_dimension_numbers<[1], [0], [0], [1], [0, 0, 1, 1], [], []>} : vector<16x16xbf16>, vector<16x128xbf16>, vector<16x128xf32> -> vector<16x128xf32>
      %110 = arith.addf %105, %109 : vector<16x128xf32>
      %c1_67 = arith.constant 1 : index
      %c0_68 = arith.constant 0 : index
      %c0_69 = arith.constant 0 : index
      %111 = vector.load %arg10[%c1_67, %c0_68, %c0_69] : memref<2x16x128xf32, #tpu.memory_space<vmem>>, vector<1x16x128xf32>
      %112 = vector.shape_cast %111 : vector<1x16x128xf32> to vector<16x128xf32>
      %113 = vector.shape_cast %110 : vector<16x128xf32> to vector<1x16x128xf32>
      tpu.vector_store %arg10[%c1_67, %c0_68, %c0_69], %113 {strides = array<i32>} : memref<2x16x128xf32, #tpu.memory_space<vmem>>, vector<1x16x128xf32>,
      %c1_70 = arith.constant 1 : index
      %c0_71 = arith.constant 0 : index
      %c0_72 = arith.constant 0 : index
      %114 = vector.load %arg8[%c1_70, %c0_71, %c0_72] : memref<2x16x1xf32, #tpu.memory_space<vmem>>, vector<1x16x1xf32>
      %115 = vector.shape_cast %114 : vector<1x16x1xf32> to vector<16x1xf32>
      %116 = vector.shape_cast %85 : vector<16x1xf32> to vector<1x16x1xf32>
      tpu.vector_store %arg8[%c1_70, %c0_71, %c0_72], %116 {strides = array<i32>} : memref<2x16x1xf32, #tpu.memory_space<vmem>>, vector<1x16x1xf32>,
    } else {
    }
    %c0_i32_3 = arith.constant 0 : i32
    %10 = arith.cmpi eq, %arg1, %c0_i32_3 : i32
    %11 = arith.extui %10 : i1 to i32
    %c0_i32_4 = arith.constant 0 : i32
    %12 = arith.cmpi ne, %11, %c0_i32_4 : i32
    scf.if %12 {
      %c0 = arith.constant 0 : index
      %c0_5 = arith.constant 0 : index
      %c0_6 = arith.constant 0 : index
      %13 = vector.load %arg9[%c0, %c0_5, %c0_6] : memref<2x16x1xf32, #tpu.memory_space<vmem>>, vector<2x16x1xf32>
      %cst = arith.constant 9.99999968E-21 : f32
      %14 = vector.broadcast %cst : f32 to vector<2x16x1xf32>
      %15 = arith.maximumf %13, %14 : vector<2x16x1xf32>
      %16 = tpu.reciprocal %15 {approx = true} : vector<2x16x1xf32> -> vector<2x16x1xf32>
      %c0_7 = arith.constant 0 : index
      %c0_8 = arith.constant 0 : index
      %c0_9 = arith.constant 0 : index
      %17 = vector.load %arg10[%c0_7, %c0_8, %c0_9] : memref<2x16x128xf32, #tpu.memory_space<vmem>>, vector<2x16x128xf32>
      %18 = vector.broadcast %16 : vector<2x16x1xf32> to vector<2x16x128xf32>
      %19 = arith.mulf %17, %18 : vector<2x16x128xf32>
      %20 = arith.truncf %19 : vector<2x16x128xf32> to vector<2x16x128xbf16>
      %c0_10 = arith.constant 0 : index
      %c0_11 = arith.constant 0 : index
      %c0_12 = arith.constant 0 : index
      %21 = vector.load %arg7[%c0_10, %c0_11, %c0_12] : memref<2x16x128xbf16, #tpu.memory_space<vmem>>, vector<2x16x128xbf16>
      tpu.vector_store %arg7[%c0_10, %c0_11, %c0_12], %20 {strides = array<i32>} : memref<2x16x128xbf16, #tpu.memory_space<vmem>>, vector<2x16x128xbf16>,
    } else {
    }
    return
  }
  func.func @transform_0(%arg0: i32, %arg1: i32, %arg2: memref<1xi32, #tpu.memory_space<smem>>) -> (i32, i32, i32) {
    %c0_i32 = arith.constant 0 : i32
    %c0_i32_0 = arith.constant 0 : i32
    %c0_i32_1 = arith.constant 0 : i32
    return %c0_i32, %c0_i32_0, %arg1 : i32, i32, i32
  }
  func.func @transform_1(%arg0: i32, %arg1: i32, %arg2: memref<1xi32, #tpu.memory_space<smem>>) -> (i32, i32, i32) {
    %c0_i32 = arith.constant 0 : i32
    %c0_i32_0 = arith.constant 0 : i32
    %c0_i32_1 = arith.constant 0 : i32
    return %c0_i32, %arg0, %c0_i32_0 : i32, i32, i32
  }
  func.func @transform_2(%arg0: i32, %arg1: i32, %arg2: memref<1xi32, #tpu.memory_space<smem>>) -> (i32, i32) {
    %c0_i32 = arith.constant 0 : i32
    return %arg0, %arg1 : i32, i32
  }
  func.func @transform_3(%arg0: i32, %arg1: i32, %arg2: memref<1xi32, #tpu.memory_space<smem>>) -> (i32, i32, i32) {
    %c0_i32 = arith.constant 0 : i32
    %c0_i32_0 = arith.constant 0 : i32
    %c0_i32_1 = arith.constant 0 : i32
    return %c0_i32, %arg1, %c0_i32_0 : i32, i32, i32
  }
  func.func @transform_4(%arg0: i32, %arg1: i32, %arg2: memref<1xi32, #tpu.memory_space<smem>>) -> (i32, i32, i32) {
    %c0_i32 = arith.constant 0 : i32
    %c0_i32_0 = arith.constant 0 : i32
    %c0_i32_1 = arith.constant 0 : i32
    return %c0_i32, %arg0, %c0_i32_0 : i32, i32, i32
  }
}

</mosaic_0001>

<bundles_post_ra>
// kernel: gat_forward.4
= control target key start
LH: loop header
LB: loop body
LE: loop exit
PB: predicated region body
PF: predicated region fallthrough
CT: control target
= control target key end

     0   :  { %7 = vsyncpa [#allocation4], 0  ;;  %s211_s12 = smov [#allocation3]   ;;  %s212_s14 = smov 64   ;;  %s241_s0 = inlined_call_operand.vmem [shape: bf16[16,128], index: 0, kind: input, shape index: {}]   ;;  %s242_s1 = inlined_call_operand.hbm [shape: bf16[128,128], index: 1, kind: input, shape index: {}]   ;;  %s243_s2 = inlined_call_operand.vmem [shape: f32[16,128], index: 2, kind: output, shape index: {}]  }
   0x1   :  { %s14_s11 = sshll.u32 %s242_s1, 4  ;;  %s16_s13 = sshll.u32 %s211_s12, 4  ;;  %s15_s11 = int_to_ptr.hbm [resolvable:$true] %s14_s11  ;;  %s17_s13 = int_to_ptr.vmem [resolvable:$true] %s16_s13 }
   0x2   :  { %s213_s15 = smov 4  }
   0x3   :  { %22 = dma.hbm_to_vmem [thread:$0]  %s15_s11, 1024, %s17_s13, [#allocation4], %s212_s14, %s212_s14, %s213_s15  }
   0x4   :  { %209 = dma.done.wait [#allocation4], 1024  }
   0x5   :  { %210 = vsyncadd [#allocation4], 4294966272  ;;  %v181_v0 = vld [vmem:[#allocation3 + $0x38] sm:$0xff]  ;;  %v180_v1 = vld [vmem:[#allocation3 + $0x30] sm:$0xff] }
   0x6   :  { %107 = vmatpush.bf16.msra.mxu0 %v181_v0  ;;  %v179_v2 = vld [vmem:[#allocation3 + $0x28] sm:$0xff]  ;;  %v178_v3 = vld [vmem:[#allocation3 + $0x20] sm:$0xff]  ;;  %v177_v4 = vld [vmem:[#allocation3 + $0x18] sm:$0xff] }
   0x7   :  { %v176_v5 = vld [vmem:[#allocation3 + $0x10] sm:$0xff]  ;;  %v175_v6 = vld [vmem:[#allocation3 + $0x8] sm:$0xff]  ;;  %v174_v7 = vld [vmem:[#allocation3] sm:$0xff] }
   0x8   :  { %v173_v8 = vld [vmem:[%s241_s0] sm:$0xff] }
   0xa   :  { %108 = vmatpush.bf16.msra.mxu0 %v180_v1 }
   0xe   :  { %109 = vmatpush.bf16.msra.mxu0 %v179_v2 }
  0x12   :  { %110 = vmatpush.bf16.msra.mxu0 %v178_v3 }
  0x16   :  { %111 = vmatpush.bf16.msra.mxu0 %v177_v4 }
  0x1a   :  { %112 = vmatpush.bf16.msra.mxu0 %v176_v5 }
  0x1e   :  { %113 = vmatpush.bf16.msra.mxu0 %v175_v6 }
  0x22   :  { %114 = vmatpush.bf16.msra.mxu0 %v174_v7 }
  0x25   :  { %115 = vmatmul.bf16.vlgmr.msra.gmra.mxu0 %v173_v8 }
  0xa2   :  { %v116_v9 = vpop.f32.mrf.mxu0 }
  0xa3   :  { %130 = vst [vmem:[%s243_s2] sm:$0xff] %v116_v9 }
  0xaa   :  { %v118_v10 = vpop.f32.mrf.mxu0 }
  0xab   :  { %131 = vst [vmem:[%s243_s2 + $0x8] sm:$0xff] %v118_v10 }
  0xac   :  { %136 = vsyncpa [#allocation4], 1 }

// kernel: gat_forward.6
= control target key start
LH: loop header
LB: loop body
LE: loop exit
PB: predicated region body
PF: predicated region fallthrough
CT: control target
= control target key end

     0   :  { %s213_s1 = inlined_call_operand.vmem [shape: bf16[128,128], index: 1, kind: input, shape index: {}]   ;;  %s214_s0 = inlined_call_operand.vmem [shape: bf16[16,128], index: 0, kind: input, shape index: {}]   ;;  %s215_s2 = inlined_call_operand.vmem [shape: f32[16,128], index: 2, kind: output, shape index: {}]  }
   0x1   :  { %v164_v0 = vld [vmem:[%s213_s1 + $0x38] sm:$0xff]  ;;  %v163_v1 = vld [vmem:[%s213_s1 + $0x30] sm:$0xff]  ;;  %v162_v2 = vld [vmem:[%s213_s1 + $0x28] sm:$0xff] }
   0x2   :  { %91 = vmatpush.bf16.msra.mxu0 %v164_v0  ;;  %v161_v3 = vld [vmem:[%s213_s1 + $0x20] sm:$0xff]  ;;  %v160_v4 = vld [vmem:[%s213_s1 + $0x18] sm:$0xff]  ;;  %v159_v5 = vld [vmem:[%s213_s1 + $0x10] sm:$0xff] }
   0x3   :  { %v158_v6 = vld [vmem:[%s213_s1 + $0x8] sm:$0xff]  ;;  %v157_v7 = vld [vmem:[%s213_s1] sm:$0xff] }
   0x4   :  { %v156_v8 = vld [vmem:[%s214_s0] sm:$0xff] }
   0x6   :  { %92 = vmatpush.bf16.msra.mxu0 %v163_v1 }
   0xa   :  { %93 = vmatpush.bf16.msra.mxu0 %v162_v2 }
   0xe   :  { %94 = vmatpush.bf16.msra.mxu0 %v161_v3 }
  0x12   :  { %95 = vmatpush.bf16.msra.mxu0 %v160_v4 }
  0x16   :  { %96 = vmatpush.bf16.msra.mxu0 %v159_v5 }
  0x1a   :  { %97 = vmatpush.bf16.msra.mxu0 %v158_v6 }
  0x1e   :  { %98 = vmatpush.bf16.msra.mxu0 %v157_v7 }
  0x21   :  { %99 = vmatmul.bf16.vlgmr.msra.gmra.mxu0 %v156_v8 }
  0x9e   :  { %v100_v9 = vpop.f32.mrf.mxu0 }
  0x9f   :  { %114 = vst [vmem:[%s215_s2] sm:$0xff] %v100_v9 }
  0xa6   :  { %v102_v10 = vpop.f32.mrf.mxu0 }
  0xa7   :  { %115 = vst [vmem:[%s215_s2 + $0x8] sm:$0xff] %v102_v10 }

// kernel: gat_forward.5
= control target key start
LH: loop header
LB: loop body
LE: loop exit
PB: predicated region body
PF: predicated region fallthrough
CT: control target
= control target key end

     0   :  { %vm24_vm0 = vcmask 7168   ;;  %v422_v0 = vmov -1e+30   ;;  %v423_v1 = vmov 0.0   ;;  %s556_s0 = inlined_call_operand.<no memory space> [shape: s32[1], index: 0, kind: input, shape index: {}]   ;;  %s557_s1 = inlined_call_operand.vmem [shape: f32[2,1,16], index: 1, kind: input, shape index: {}]   ;;  %s558_s2 = inlined_call_operand.vmem [shape: f32[2,16,1], index: 2, kind: input, shape index: {}]   ;;  %s559_s3 = inlined_call_operand.vmem [shape: s8[16,16], index: 3, kind: input, shape index: {}]   ;;  %s560_s4 = inlined_call_operand.vmem [shape: bf16[2,16,128], index: 4, kind: input, shape index: {}]   ;;  %s561_s5 = inlined_call_operand.vmem [shape: bf16[2,16,128], index: 5, kind: output, shape index: {}]  }
   0x1   :  { %25 = vst.msk [vmem:[#allocation2] sm:$0xff] %vm24_vm0, %v422_v0  ;;  %p354_p0 = scmp.le.s32.totalorder %s556_s0, 0 }
   0x2   :  { %26 = vst.msk [vmem:[#allocation2 + $0x8] sm:$0xff] %vm24_vm0, %v422_v0 }
   0x3   :  { %27 = vst.msk [vmem:[#allocation2 + $0x10] sm:$0xff] %vm24_vm0, %v422_v0 }
   0x4   :  { %28 = vst.msk [vmem:[#allocation2 + $0x18] sm:$0xff] %vm24_vm0, %v422_v0 }
   0x5   :  { %29 = vst.msk [vmem:[#allocation3] sm:$0xff] %vm24_vm0, %v423_v1 }
   0x6   :  { %30 = vst.msk [vmem:[#allocation3 + $0x8] sm:$0xff] %vm24_vm0, %v423_v1 }
   0x7   :  { %31 = vst.msk [vmem:[#allocation3 + $0x10] sm:$0xff] %vm24_vm0, %v423_v1 }
   0x8   :  { %32 = vst.msk [vmem:[#allocation3 + $0x18] sm:$0xff] %vm24_vm0, %v423_v1  ;;  %42 = sbr.rel (%p354_p0) target bundleno = 521 (0x209), region = 25 }
   0x9   :  { %33 = vst [vmem:[#allocation4 + $0x10] sm:$0xff] %v423_v1 }
   0xa   :  { %34 = vst [vmem:[#allocation4] sm:$0xff] %v423_v1 }
   0xb   :  { %35 = vst [vmem:[#allocation4 + $0x18] sm:$0xff] %v423_v1 }
   0xc   :  { %36 = vst [vmem:[#allocation4 + $0x8] sm:$0xff] %v423_v1 }
   0xd   :  { %v51_v2 = vld [vmem:[%s558_s2] sm:$0xff]  ;;  %v360_v3 = vld [vmem:[%s558_s2 + $0x10] sm:$0xff]  ;;  %v424_v4 = vmov 0   ;;  %v52_v5 = vld [vmem:[%s558_s2 + $0x8] sm:$0xff]  ;;  %vm79_vm4 = vcmask 130048  }
   0xe   :  { %391 = vset.pattern.permute.xlu0 %v424_v4  ;;  %392 = vset.pattern.permute.xlu1 %v424_v4  ;;  %v361_v6 = vld [vmem:[%s558_s2 + $0x18] sm:$0xff]  ;;  %v384_v7 = vld [vmem:[%s559_s3] sm:$0xf]   ;;  %v202_v39 = vld [vmem:[#allocation2 + $0x10] sm:$0xff] }
   0xf   :  { %56 = vperm.xlu0 %391, %v51_v2   ;;  %180 = vperm.xlu1 %392, %v360_v3   ;;  %v385_v8 = vunpack.c.0.s8 %v384_v7  ;;  %v394_v9 = vld [vmem:[%s557_s1] ss:$0 sm:$0xff]  ;;  %v395_v10 = vld [vmem:[%s557_s1 + $0x1] ss:$0 sm:$0xff]  ;;  %v386_v16 = vunpack.c.1.s8 %v384_v7  ;;  %v78_v44 = vld [vmem:[#allocation2 + $0x8] sm:$0xff] }
  0x10   :  { %393 = vset.pattern.permute.xlu2 %v424_v4  ;;  %v77_v38 = vld [vmem:[#allocation2] sm:$0xff]  ;;  %v514_v45 = vld [vmem:[#allocation2 + $0x18] sm:$0xff]  ;;  %v371_v61 = vld [vmem:[%s560_s4 + $0x8] sm:$0xff] }
  0x11   :  { %v488_v11 = vcvt.s32.f32 %v385_v8  ;;  %v493_v22 = vcvt.s32.f32 %v386_v16  ;;  %v370_v58 = vld [vmem:[%s560_s4] sm:$0xff]  ;;  %286 = vmatpush.bf16.msra.mxu1 %v371_v61 }
  0x12   :  { %160 = vmatpush.bf16.msra.mxu0 %v370_v58 }
  0x13   :  { %vm49_vm1 = vcmp.gt.f32.partialorder %v488_v11, 0.0  ;;  %vm50_vm5 = vcmp.gt.f32.partialorder %v493_v22, 0.0 }
  0x17   :  { %61 = vperm.xlu0 %391, %v52_v5   ;;  %185 = vperm.xlu1 %392, %v361_v6  }
  0x81   :  { %v57_v12 = vpop.permute.xlu0 %56  ;;  %v181_v13 = vpop.permute.xlu1 %180 }
  0x82   :  { %v67_v14 = vadd.f32 %v394_v9, %v57_v12  ;;  %v191_v15 = vadd.f32 %v395_v10, %v181_v13 }
  0x84   :  { %v71_v17 = vmul.f32 0.2, %v67_v14  ;;  %v195_v18 = vmul.f32 0.2, %v191_v15  ;;  %vm69_vm2 = vcmp.gt.f32.partialorder %v67_v14, 0.0  ;;  %vm193_vm3 = vcmp.gt.f32.partialorder %v191_v15, 0.0 }
  0x86   :  { %v73_v19 = vsel %vm69_vm2, %v67_v14, %v71_v17  ;;  %v197_v20 = vsel %vm193_vm3, %v191_v15, %v195_v18 }
  0x87   :  { %v75_v21 = vsel %vm49_vm1, %v73_v19, -1e+30  ;;  %v497_v23 = vsel %vm49_vm1, %v197_v20, -1e+30 }
  0x88   :  { %v80_v24 = vsel %vm79_vm4, %v75_v21, -inf  ;;  %v204_v25 = vsel %vm79_vm4, %v497_v23, -inf }
  0x89   :  { %v62_v26 = vpop.permute.xlu0 %61  ;;  %81 = vmax.xlane.f32.xlu2 %v80_v24  ;;  %v186_v27 = vpop.permute.xlu1 %185  ;;  %205 = vmax.xlane.f32.xlu0 %v204_v25 }
  0x8a   :  { %v68_v28 = vadd.f32 %v394_v9, %v62_v26  ;;  %v192_v29 = vadd.f32 %v395_v10, %v186_v27  ;;  %v112_v27 = vld [vmem:[#allocation3] sm:$0xff] }
  0x8c   :  { %v72_v30 = vmul.f32 0.2, %v68_v28  ;;  %v196_v31 = vmul.f32 0.2, %v192_v29  ;;  %vm70_vm6 = vcmp.gt.f32.partialorder %v68_v28, 0.0  ;;  %vm194_vm7 = vcmp.gt.f32.partialorder %v192_v29, 0.0 }
  0x8e   :  { %v74_v32 = vsel %vm70_vm6, %v68_v28, %v72_v30  ;;  %v198_v33 = vsel %vm194_vm7, %v192_v29, %v196_v31  ;;  %v113_v31 = vld [vmem:[#allocation3 + $0x8] sm:$0xff] }
  0x8f   :  { %v76_v34 = vsel %vm50_vm5, %v74_v32, -1e+30  ;;  %v507_v35 = vsel %vm50_vm5, %v198_v33, -1e+30 }
  0x90   :  { %v83_v36 = vsel %vm79_vm4, %v76_v34, -inf  ;;  %v207_v37 = vsel %vm79_vm4, %v507_v35, -inf }
  0x91   :  { %84 = vmax.xlane.f32.xlu2 %v83_v36  ;;  %208 = vmax.xlane.f32.xlu1 %v207_v37  ;;  %v127_v36 = vld [vmem:[#allocation4 + $0x10] sm:$0xff] }
  0xfc   :  { %v82_v40 = vpop.xlane.xlu2 %81  ;;  %v206_v41 = vpop.xlane.xlu0 %205 }
  0xfd   :  { %v86_v42 = vmax.f32 %v77_v38, %v82_v40  ;;  %v210_v43 = vmax.f32 %v202_v39, %v206_v41 }
  0xff   :  { %171 = vst.msk [vmem:[#allocation2] sm:$0xff] %vm24_vm0, %v86_v42  ;;  %96 = vperm.xlu2 %393, %v86_v42   ;;  %v88_v52 = vsub.f32 %v77_v38, %v86_v42  ;;  %v212_v54 = vsub.f32 %v202_v39, %v210_v43 }
 0x100   :  { %297 = vst.msk [vmem:[#allocation2 + $0x10] sm:$0xff] %vm24_vm0, %v210_v43 }
 0x101   :  { %v90_v53 = vmul.f32 1.442695, %v88_v52  ;;  %v214_v55 = vmul.f32 1.442695, %v212_v54 }
 0x103   :  { %396 = vpow2.f32 %v90_v53  ;;  %v252_v53 = vld [vmem:[#allocation4 + $0x18] sm:$0xff] }
 0x104   :  { %v85_v46 = vpop.xlane.xlu2 %84  ;;  %v209_v47 = vpop.xlane.xlu1 %208  ;;  %398 = vpow2.f32 %v214_v55 }
 0x105   :  { %v87_v48 = vmax.f32 %v78_v44, %v85_v46  ;;  %v211_v49 = vmax.f32 %v514_v45, %v209_v47 }
 0x107   :  { %v89_v50 = vsub.f32 %v78_v44, %v87_v48  ;;  %172 = vst.msk [vmem:[#allocation2 + $0x8] sm:$0xff] %vm24_vm0, %v87_v48  ;;  %101 = vperm.xlu2 %393, %v87_v48   ;;  %v213_v51 = vsub.f32 %v514_v45, %v211_v49  ;;  %v238_v44 = vld [vmem:[#allocation3 + $0x18] sm:$0xff]  ;;  %v128_v45 = vld [vmem:[#allocation4] sm:$0xff] }
 0x108   :  { %298 = vst.msk [vmem:[#allocation2 + $0x18] sm:$0xff] %vm24_vm0, %v211_v49 }
 0x109   :  { %v397_v56 = vpop.eup %396  ;;  %v92_v13 = vmul.f32 1.442695, %v89_v50  ;;  %v216_v26 = vmul.f32 1.442695, %v213_v51 }
 0x10a   :  { %v520_v57 = vpop.eup %398  ;;  %v114_v28 = vmul.f32 %v397_v56, %v112_v27 }
 0x10f   :  { %220 = vperm.xlu2 %393, %v210_v43  }
 0x117   :  { %225 = vperm.xlu2 %393, %v211_v49  }
 0x11f   :  { %131 = vperm.xlu2 %393, %v397_v56  }
 0x127   :  { %256 = vperm.xlu2 %393, %v520_v57  }
 0x159   :  { %v97_v59 = vpop.permute.xlu2 %96 }
 0x15a   :  { %v104_v60 = vsub.f32 %v75_v21, %v97_v59 }
 0x15c   :  { %v106_v62 = vmul.f32 1.442695, %v104_v60 }
 0x15e   :  { %400 = vpow2.f32 %v106_v62 }
 0x161   :  { %v102_v63 = vpop.permute.xlu2 %101 }
 0x162   :  { %v105_v0 = vsub.f32 %v76_v34, %v102_v63 }
 0x164   :  { %v401_v1 = vpop.eup %400  ;;  %v108_v2 = vmul.f32 1.442695, %v105_v0 }
 0x165   :  { %v110_v3 = vsel %vm49_vm1, %v401_v1, 0.0 }
 0x166   :  { %402 = vpow2.f32 %v108_v2  ;;  %v116_v4 = vsel %vm79_vm4, %v110_v3, 0.0 }
 0x167   :  { %117 = vadd.xlane.f32.xlu0 %v116_v4 }
 0x169   :  { %v221_v5 = vpop.permute.xlu2 %220 }
 0x16a   :  { %v228_v6 = vsub.f32 %v497_v23, %v221_v5 }
 0x16c   :  { %v403_v7 = vpop.eup %402  ;;  %v230_v8 = vmul.f32 1.442695, %v228_v6 }
 0x16d   :  { %v111_v9 = vsel %vm50_vm5, %v403_v7, 0.0 }
 0x16e   :  { %404 = vpow2.f32 %v230_v8  ;;  %v119_v10 = vsel %vm79_vm4, %v111_v9, 0.0  ;;  %v141_v12 = vpack.c.bf16 %v111_v9, %v110_v3 }
 0x16f   :  { %120 = vadd.xlane.f32.xlu1 %v119_v10  ;;  %406 = vpow2.f32 %v92_v13 }
 0x170   :  { %359 = vmatmul.msk.bf16.vlgmr.msra.gmra.mxu0 %vm79_vm4, %v141_v12 }
 0x171   :  { %v226_v14 = vpop.permute.xlu2 %225 }
 0x172   :  { %v229_v15 = vsub.f32 %v507_v35, %v226_v14  ;;  %v237_v35 = vld [vmem:[#allocation3 + $0x10] sm:$0xff] }
 0x173   :  { %v239_v37 = vmul.f32 %v520_v57, %v237_v35  ;;  %v253_v57 = vld [vmem:[#allocation4 + $0x8] sm:$0xff] }
 0x174   :  { %v405_v16 = vpop.eup %404  ;;  %v232_v17 = vmul.f32 1.442695, %v229_v15 }
 0x175   :  { %v234_v18 = vsel %vm49_vm1, %v405_v16, 0.0  ;;  %v407_v20 = vpop.eup %406 }
 0x176   :  { %408 = vpow2.f32 %v232_v17  ;;  %v241_v19 = vsel %vm79_vm4, %v234_v18, 0.0  ;;  %v115_v22 = vmul.f32 %v407_v20, %v113_v31 }
 0x177   :  { %242 = vadd.xlane.f32.xlu1 %v241_v19  ;;  %410 = vpow2.f32 %v216_v26 }
 0x179   :  { %v132_v32 = vpop.permute.xlu2 %131 }
 0x17a   :  { %v139_v41 = vmul.f32 %v132_v32, %v127_v36 }
 0x17b   :  { %136 = vperm.xlu0 %391, %v407_v20  }
 0x17c   :  { %v409_v21 = vpop.eup %408 }
 0x17d   :  { %v235_v23 = vsel %vm50_vm5, %v409_v21, 0.0  ;;  %v411_v11 = vpop.eup %410 }
 0x17e   :  { %v244_v24 = vsel %vm79_vm4, %v235_v23, 0.0  ;;  %v266_v25 = vpack.c.bf16 %v235_v23, %v234_v18  ;;  %v240_v47 = vmul.f32 %v411_v11, %v238_v44 }
 0x17f   :  { %245 = vadd.xlane.f32.xlu2 %v244_v24 }
 0x180   :  { %369 = vmatmul.msk.bf16.vlgmr.msra.gmra.mxu1 %vm79_vm4, %v266_v25 }
 0x181   :  { %v257_v38 = vpop.permute.xlu2 %256 }
 0x182   :  { %v264_v54 = vmul.f32 %v257_v38, %v252_v53 }
 0x190   :  { %261 = vperm.xlu1 %392, %v411_v11  }
 0x1da   :  { %v118_v29 = vpop.xlane.xlu0 %117 }
 0x1db   :  { %v122_v30 = vadd.f32 %v118_v29, %v114_v28 }
 0x1dd   :  { %125 = vst.msk [vmem:[#allocation3] sm:$0xff] %vm24_vm0, %v122_v30 }
 0x1e2   :  { %v121_v33 = vpop.xlane.xlu1 %120 }
 0x1e3   :  { %v123_v34 = vadd.f32 %v121_v33, %v115_v22 }
 0x1e5   :  { %126 = vst.msk [vmem:[#allocation3 + $0x8] sm:$0xff] %vm24_vm0, %v123_v34 }
 0x1ea   :  { %v243_v39 = vpop.xlane.xlu1 %242 }
 0x1eb   :  { %v247_v40 = vadd.f32 %v243_v39, %v239_v37 }
 0x1ed   :  { %249 = vst.msk [vmem:[#allocation3 + $0x10] sm:$0xff] %vm24_vm0, %v247_v40  ;;  %v162_v42 = vpop.f32.mrf.mxu0  ;;  %v137_v46 = vpop.permute.xlu0 %136 }
 0x1ee   :  { %v167_v43 = vadd.f32 %v162_v42, %v139_v41  ;;  %v140_v50 = vmul.f32 %v137_v46, %v128_v45 }
 0x1f0   :  { %169 = vst [vmem:[#allocation4 + $0x10] sm:$0xff] %v167_v43 }
 0x1f2   :  { %v246_v48 = vpop.xlane.xlu2 %245 }
 0x1f3   :  { %v248_v49 = vadd.f32 %v246_v48, %v240_v47 }
 0x1f5   :  { %250 = vst.msk [vmem:[#allocation3 + $0x18] sm:$0xff] %vm24_vm0, %v248_v49  ;;  %v164_v51 = vpop.f32.mrf.mxu0 }
 0x1f6   :  { %v168_v52 = vadd.f32 %v164_v51, %v140_v50 }
 0x1f8   :  { %170 = vst [vmem:[#allocation4] sm:$0xff] %v168_v52 }
 0x1fd   :  { %v288_v55 = vpop.f32.mrf.mxu1 }
 0x1fe   :  { %v293_v56 = vadd.f32 %v288_v55, %v264_v54 }
 0x200   :  { %295 = vst [vmem:[#allocation4 + $0x18] sm:$0xff] %v293_v56 }
 0x202   :  { %v262_v58 = vpop.permute.xlu1 %261 }
 0x203   :  { %v265_v59 = vmul.f32 %v262_v58, %v253_v57 }
 0x205   :  { %v290_v60 = vpop.f32.mrf.mxu1 }
 0x206   :  { %v294_v61 = vadd.f32 %v290_v60, %v265_v59 }
 0x208   :  { %296 = vst [vmem:[#allocation4 + $0x8] sm:$0xff] %v294_v61 }
 0x209 PF:  { %v302_v63 = vld [vmem:[#allocation3] sm:$0xff]  ;;  %v425_v0 = vmov 0   ;;  %v303_v4 = vld [vmem:[#allocation3 + $0x8] sm:$0xff] }
 0x20a   :  { %v304_v62 = vld [vmem:[#allocation3 + $0x10] sm:$0xff]  ;;  %413 = vset.pattern.permute.xlu1 %v425_v0  ;;  %412 = vset.pattern.permute.xlu0 %v425_v0  ;;  %v306_v2 = vmax.f32 %v302_v63, 1e-20  ;;  %v307_v6 = vmax.f32 %v303_v4, 1e-20 }
 0x20b   :  { %v308_v1 = vmax.f32 %v304_v62, 1e-20  ;;  %v305_v3 = vld [vmem:[#allocation3 + $0x18] sm:$0xff] }
 0x20c   :  { %v309_v5 = vmax.f32 %v305_v3, 1e-20  ;;  %v314_v16 = vld [vmem:[#allocation4 + $0x10] sm:$0xff] }
 0x20d   :  { %414 = vrcp.f32 %v308_v1  ;;  %v315_v17 = vld [vmem:[#allocation4] sm:$0xff] }
 0x20e   :  { %416 = vrcp.f32 %v306_v2  ;;  %v316_v14 = vld [vmem:[#allocation4 + $0x18] sm:$0xff] }
 0x20f   :  { %418 = vrcp.f32 %v309_v5  ;;  %v317_v15 = vld [vmem:[#allocation4 + $0x8] sm:$0xff] }
 0x210   :  { %420 = vrcp.f32 %v307_v6 }
 0x213   :  { %v415_v7 = vpop.eup %414 }
 0x214   :  { %v417_v8 = vpop.eup %416  ;;  %330 = vperm.xlu1 %413, %v415_v7  }
 0x215   :  { %320 = vperm.xlu0 %412, %v417_v8   ;;  %v419_v9 = vpop.eup %418 }
 0x216   :  { %v421_v10 = vpop.eup %420 }
 0x21c   :  { %335 = vperm.xlu1 %413, %v419_v9  }
 0x21d   :  { %325 = vperm.xlu0 %412, %v421_v10  }
 0x286   :  { %v331_v12 = vpop.permute.xlu1 %330 }
 0x287   :  { %v321_v13 = vpop.permute.xlu0 %320  ;;  %v340_v19 = vmul.f32 %v331_v12, %v316_v14 }
 0x288   :  { %v338_v23 = vmul.f32 %v321_v13, %v314_v16 }
 0x28e   :  { %v336_v18 = vpop.permute.xlu1 %335 }
 0x28f   :  { %v341_v20 = vmul.f32 %v336_v18, %v317_v15  ;;  %v326_v21 = vpop.permute.xlu0 %325 }
 0x290   :  { %v339_v24 = vmul.f32 %v326_v21, %v315_v17 }
 0x291   :  { %v380_v25 = vpack.c.bf16 %v341_v20, %v340_v19 }
 0x292   :  { %v375_v26 = vpack.c.bf16 %v339_v24, %v338_v23 }
 0x293   :  { %382 = vst [vmem:[%s561_s5 + $0x8] sm:$0xff] %v380_v25  }
 0x294   :  { %376 = vst [vmem:[%s561_s5] sm:$0xff] %v375_v26  }

// kernel: gat_forward.7
= control target key start
LH: loop header
LB: loop body
LE: loop exit
PB: predicated region body
PF: predicated region fallthrough
CT: control target
= control target key end

     0   :  { %vm24_vm0 = vcmask 7168   ;;  %v417_v0 = vmov -1e+30   ;;  %v418_v1 = vmov 0.0   ;;  %s545_s0 = inlined_call_operand.<no memory space> [shape: s32[1], index: 0, kind: input, shape index: {}]   ;;  %s546_s1 = inlined_call_operand.vmem [shape: f32[1,1,16], index: 1, kind: input, shape index: {}]   ;;  %s547_s2 = inlined_call_operand.vmem [shape: f32[1,16,1], index: 2, kind: input, shape index: {}]   ;;  %s548_s3 = inlined_call_operand.vmem [shape: s8[16,16], index: 3, kind: input, shape index: {}]   ;;  %s549_s4 = inlined_call_operand.vmem [shape: bf16[2,16,128], index: 4, kind: input, shape index: {}]   ;;  %s550_s5 = inlined_call_operand.vmem [shape: bf16[2,16,128], index: 5, kind: output, shape index: {}]  }
   0x1   :  { %25 = vst.msk [vmem:[#allocation2] sm:$0xff] %vm24_vm0, %v417_v0  ;;  %p352_p0 = scmp.le.s32.totalorder %s545_s0, 0 }
   0x2   :  { %26 = vst.msk [vmem:[#allocation2 + $0x8] sm:$0xff] %vm24_vm0, %v417_v0 }
   0x3   :  { %27 = vst.msk [vmem:[#allocation2 + $0x10] sm:$0xff] %vm24_vm0, %v417_v0 }
   0x4   :  { %28 = vst.msk [vmem:[#allocation2 + $0x18] sm:$0xff] %vm24_vm0, %v417_v0 }
   0x5   :  { %29 = vst.msk [vmem:[#allocation3] sm:$0xff] %vm24_vm0, %v418_v1 }
   0x6   :  { %30 = vst.msk [vmem:[#allocation3 + $0x8] sm:$0xff] %vm24_vm0, %v418_v1 }
   0x7   :  { %31 = vst.msk [vmem:[#allocation3 + $0x10] sm:$0xff] %vm24_vm0, %v418_v1 }
   0x8   :  { %32 = vst.msk [vmem:[#allocation3 + $0x18] sm:$0xff] %vm24_vm0, %v418_v1  ;;  %42 = sbr.rel (%p352_p0) target bundleno = 521 (0x209), region = 25 }
   0x9   :  { %33 = vst [vmem:[#allocation4 + $0x10] sm:$0xff] %v418_v1 }
   0xa   :  { %34 = vst [vmem:[#allocation4] sm:$0xff] %v418_v1 }
   0xb   :  { %35 = vst [vmem:[#allocation4 + $0x18] sm:$0xff] %v418_v1 }
   0xc   :  { %36 = vst [vmem:[#allocation4 + $0x8] sm:$0xff] %v418_v1 }
   0xd   :  { %v51_v2 = vld [vmem:[%s547_s2] sm:$0xff]  ;;  %v419_v3 = vmov 0   ;;  %v52_v4 = vld [vmem:[%s547_s2 + $0x8] sm:$0xff]  ;;  %vm79_vm4 = vcmask 130048   ;;  %v200_v37 = vld [vmem:[#allocation2 + $0x10] sm:$0xff] }
   0xe   :  { %386 = vset.pattern.permute.xlu0 %v419_v3  ;;  %387 = vset.pattern.permute.xlu1 %v419_v3  ;;  %v379_v5 = vld [vmem:[%s548_s3] sm:$0xf]   ;;  %v78_v42 = vld [vmem:[#allocation2 + $0x8] sm:$0xff]  ;;  %v503_v43 = vld [vmem:[#allocation2 + $0x18] sm:$0xff] }
   0xf   :  { %56 = vperm.xlu0 %386, %v51_v2   ;;  %178 = vperm.xlu1 %387, %v51_v2   ;;  %v380_v6 = vunpack.c.0.s8 %v379_v5  ;;  %v389_v7 = vld [vmem:[%s546_s1] ss:$0 sm:$0xff]  ;;  %v381_v14 = vunpack.c.1.s8 %v379_v5  ;;  %v366_v59 = vld [vmem:[%s549_s4 + $0x8] sm:$0xff] }
  0x10   :  { %388 = vset.pattern.permute.xlu2 %v419_v3  ;;  %v390_v8 = vld [vmem:[%s546_s1] ss:$0 sm:$0xff]  ;;  %284 = vmatpush.bf16.msra.mxu1 %v366_v59 }
  0x11   :  { %v477_v9 = vcvt.s32.f32 %v380_v6  ;;  %v482_v20 = vcvt.s32.f32 %v381_v14  ;;  %v77_v36 = vld [vmem:[#allocation2] sm:$0xff] }
  0x12   :  { %v365_v56 = vld [vmem:[%s549_s4] sm:$0xff] }
  0x13   :  { %vm49_vm1 = vcmp.gt.f32.partialorder %v477_v9, 0.0  ;;  %vm50_vm5 = vcmp.gt.f32.partialorder %v482_v20, 0.0  ;;  %160 = vmatpush.bf16.msra.mxu0 %v365_v56 }
  0x17   :  { %61 = vperm.xlu0 %386, %v52_v4   ;;  %183 = vperm.xlu1 %387, %v52_v4  }
  0x81   :  { %v57_v10 = vpop.permute.xlu0 %56  ;;  %v179_v11 = vpop.permute.xlu1 %178 }
  0x82   :  { %v67_v12 = vadd.f32 %v389_v7, %v57_v10  ;;  %v189_v13 = vadd.f32 %v390_v8, %v179_v11 }
  0x84   :  { %v71_v15 = vmul.f32 0.2, %v67_v12  ;;  %v193_v16 = vmul.f32 0.2, %v189_v13  ;;  %vm69_vm2 = vcmp.gt.f32.partialorder %v67_v12, 0.0  ;;  %vm191_vm3 = vcmp.gt.f32.partialorder %v189_v13, 0.0 }
  0x86   :  { %v73_v17 = vsel %vm69_vm2, %v67_v12, %v71_v15  ;;  %v195_v18 = vsel %vm191_vm3, %v189_v13, %v193_v16 }
  0x87   :  { %v75_v19 = vsel %vm49_vm1, %v73_v17, -1e+30  ;;  %v486_v21 = vsel %vm49_vm1, %v195_v18, -1e+30 }
  0x88   :  { %v80_v22 = vsel %vm79_vm4, %v75_v19, -inf  ;;  %v202_v23 = vsel %vm79_vm4, %v486_v21, -inf }
  0x89   :  { %v62_v24 = vpop.permute.xlu0 %61  ;;  %81 = vmax.xlane.f32.xlu2 %v80_v22  ;;  %v184_v25 = vpop.permute.xlu1 %183  ;;  %203 = vmax.xlane.f32.xlu0 %v202_v23 }
  0x8a   :  { %v68_v26 = vadd.f32 %v389_v7, %v62_v24  ;;  %v190_v27 = vadd.f32 %v390_v8, %v184_v25  ;;  %v112_v25 = vld [vmem:[#allocation3] sm:$0xff] }
  0x8c   :  { %v72_v28 = vmul.f32 0.2, %v68_v26  ;;  %v194_v29 = vmul.f32 0.2, %v190_v27  ;;  %vm70_vm6 = vcmp.gt.f32.partialorder %v68_v26, 0.0  ;;  %vm192_vm7 = vcmp.gt.f32.partialorder %v190_v27, 0.0 }
  0x8e   :  { %v74_v30 = vsel %vm70_vm6, %v68_v26, %v72_v28  ;;  %v196_v31 = vsel %vm192_vm7, %v190_v27, %v194_v29  ;;  %v113_v29 = vld [vmem:[#allocation3 + $0x8] sm:$0xff] }
  0x8f   :  { %v76_v32 = vsel %vm50_vm5, %v74_v30, -1e+30  ;;  %v496_v33 = vsel %vm50_vm5, %v196_v31, -1e+30 }
  0x90   :  { %v83_v34 = vsel %vm79_vm4, %v76_v32, -inf  ;;  %v205_v35 = vsel %vm79_vm4, %v496_v33, -inf }
  0x91   :  { %84 = vmax.xlane.f32.xlu2 %v83_v34  ;;  %206 = vmax.xlane.f32.xlu1 %v205_v35  ;;  %v127_v34 = vld [vmem:[#allocation4 + $0x10] sm:$0xff] }
  0xfc   :  { %v82_v38 = vpop.xlane.xlu2 %81  ;;  %v204_v39 = vpop.xlane.xlu0 %203 }
  0xfd   :  { %v86_v40 = vmax.f32 %v77_v36, %v82_v38  ;;  %v208_v41 = vmax.f32 %v200_v37, %v204_v39 }
  0xff   :  { %171 = vst.msk [vmem:[#allocation2] sm:$0xff] %vm24_vm0, %v86_v40  ;;  %96 = vperm.xlu2 %388, %v86_v40   ;;  %v88_v50 = vsub.f32 %v77_v36, %v86_v40  ;;  %v210_v52 = vsub.f32 %v200_v37, %v208_v41 }
 0x100   :  { %295 = vst.msk [vmem:[#allocation2 + $0x10] sm:$0xff] %vm24_vm0, %v208_v41 }
 0x101   :  { %v90_v51 = vmul.f32 1.442695, %v88_v50  ;;  %v212_v53 = vmul.f32 1.442695, %v210_v52 }
 0x103   :  { %391 = vpow2.f32 %v90_v51  ;;  %v250_v51 = vld [vmem:[#allocation4 + $0x18] sm:$0xff] }
 0x104   :  { %v85_v44 = vpop.xlane.xlu2 %84  ;;  %v207_v45 = vpop.xlane.xlu1 %206  ;;  %393 = vpow2.f32 %v212_v53 }
 0x105   :  { %v87_v46 = vmax.f32 %v78_v42, %v85_v44  ;;  %v209_v47 = vmax.f32 %v503_v43, %v207_v45 }
 0x107   :  { %v89_v48 = vsub.f32 %v78_v42, %v87_v46  ;;  %172 = vst.msk [vmem:[#allocation2 + $0x8] sm:$0xff] %vm24_vm0, %v87_v46  ;;  %101 = vperm.xlu2 %388, %v87_v46   ;;  %v211_v49 = vsub.f32 %v503_v43, %v209_v47  ;;  %v236_v42 = vld [vmem:[#allocation3 + $0x18] sm:$0xff]  ;;  %v128_v43 = vld [vmem:[#allocation4] sm:$0xff] }
 0x108   :  { %296 = vst.msk [vmem:[#allocation2 + $0x18] sm:$0xff] %vm24_vm0, %v209_v47 }
 0x109   :  { %v392_v54 = vpop.eup %391  ;;  %v92_v11 = vmul.f32 1.442695, %v89_v48  ;;  %v214_v24 = vmul.f32 1.442695, %v211_v49 }
 0x10a   :  { %v509_v55 = vpop.eup %393  ;;  %v114_v26 = vmul.f32 %v392_v54, %v112_v25 }
 0x10f   :  { %218 = vperm.xlu2 %388, %v208_v41  }
 0x117   :  { %223 = vperm.xlu2 %388, %v209_v47  }
 0x11f   :  { %131 = vperm.xlu2 %388, %v392_v54  }
 0x127   :  { %254 = vperm.xlu2 %388, %v509_v55  }
 0x159   :  { %v97_v57 = vpop.permute.xlu2 %96 }
 0x15a   :  { %v104_v58 = vsub.f32 %v75_v19, %v97_v57 }
 0x15c   :  { %v106_v60 = vmul.f32 1.442695, %v104_v58 }
 0x15e   :  { %395 = vpow2.f32 %v106_v60 }
 0x161   :  { %v102_v61 = vpop.permute.xlu2 %101 }
 0x162   :  { %v105_v62 = vsub.f32 %v76_v32, %v102_v61 }
 0x164   :  { %v396_v63 = vpop.eup %395  ;;  %v108_v0 = vmul.f32 1.442695, %v105_v62 }
 0x165   :  { %v110_v1 = vsel %vm49_vm1, %v396_v63, 0.0 }
 0x166   :  { %397 = vpow2.f32 %v108_v0  ;;  %v116_v2 = vsel %vm79_vm4, %v110_v1, 0.0 }
 0x167   :  { %117 = vadd.xlane.f32.xlu0 %v116_v2 }
 0x169   :  { %v219_v3 = vpop.permute.xlu2 %218 }
 0x16a   :  { %v226_v4 = vsub.f32 %v486_v21, %v219_v3 }
 0x16c   :  { %v398_v5 = vpop.eup %397  ;;  %v228_v6 = vmul.f32 1.442695, %v226_v4 }
 0x16d   :  { %v111_v7 = vsel %vm50_vm5, %v398_v5, 0.0 }
 0x16e   :  { %399 = vpow2.f32 %v228_v6  ;;  %v119_v8 = vsel %vm79_vm4, %v111_v7, 0.0  ;;  %v141_v10 = vpack.c.bf16 %v111_v7, %v110_v1 }
 0x16f   :  { %120 = vadd.xlane.f32.xlu1 %v119_v8  ;;  %401 = vpow2.f32 %v92_v11 }
 0x170   :  { %357 = vmatmul.msk.bf16.vlgmr.msra.gmra.mxu0 %vm79_vm4, %v141_v10 }
 0x171   :  { %v224_v12 = vpop.permute.xlu2 %223 }
 0x172   :  { %v227_v13 = vsub.f32 %v496_v33, %v224_v12  ;;  %v235_v33 = vld [vmem:[#allocation3 + $0x10] sm:$0xff] }
 0x173   :  { %v237_v35 = vmul.f32 %v509_v55, %v235_v33  ;;  %v251_v55 = vld [vmem:[#allocation4 + $0x8] sm:$0xff] }
 0x174   :  { %v400_v14 = vpop.eup %399  ;;  %v230_v15 = vmul.f32 1.442695, %v227_v13 }
 0x175   :  { %v232_v16 = vsel %vm49_vm1, %v400_v14, 0.0  ;;  %v402_v18 = vpop.eup %401 }
 0x176   :  { %403 = vpow2.f32 %v230_v15  ;;  %v239_v17 = vsel %vm79_vm4, %v232_v16, 0.0  ;;  %v115_v20 = vmul.f32 %v402_v18, %v113_v29 }
 0x177   :  { %240 = vadd.xlane.f32.xlu1 %v239_v17  ;;  %405 = vpow2.f32 %v214_v24 }
 0x179   :  { %v132_v30 = vpop.permute.xlu2 %131 }
 0x17a   :  { %v139_v39 = vmul.f32 %v132_v30, %v127_v34 }
 0x17b   :  { %136 = vperm.xlu0 %386, %v402_v18  }
 0x17c   :  { %v404_v19 = vpop.eup %403 }
 0x17d   :  { %v233_v21 = vsel %vm50_vm5, %v404_v19, 0.0  ;;  %v406_v9 = vpop.eup %405 }
 0x17e   :  { %v242_v22 = vsel %vm79_vm4, %v233_v21, 0.0  ;;  %v264_v23 = vpack.c.bf16 %v233_v21, %v232_v16  ;;  %v238_v45 = vmul.f32 %v406_v9, %v236_v42 }
 0x17f   :  { %243 = vadd.xlane.f32.xlu2 %v242_v22 }
 0x180   :  { %364 = vmatmul.msk.bf16.vlgmr.msra.gmra.mxu1 %vm79_vm4, %v264_v23 }
 0x181   :  { %v255_v36 = vpop.permute.xlu2 %254 }
 0x182   :  { %v262_v52 = vmul.f32 %v255_v36, %v250_v51 }
 0x190   :  { %259 = vperm.xlu1 %387, %v406_v9  }
 0x1da   :  { %v118_v27 = vpop.xlane.xlu0 %117 }
 0x1db   :  { %v122_v28 = vadd.f32 %v118_v27, %v114_v26 }
 0x1dd   :  { %125 = vst.msk [vmem:[#allocation3] sm:$0xff] %vm24_vm0, %v122_v28 }
 0x1e2   :  { %v121_v31 = vpop.xlane.xlu1 %120 }
 0x1e3   :  { %v123_v32 = vadd.f32 %v121_v31, %v115_v20 }
 0x1e5   :  { %126 = vst.msk [vmem:[#allocation3 + $0x8] sm:$0xff] %vm24_vm0, %v123_v32 }
 0x1ea   :  { %v241_v37 = vpop.xlane.xlu1 %240 }
 0x1eb   :  { %v245_v38 = vadd.f32 %v241_v37, %v237_v35 }
 0x1ed   :  { %247 = vst.msk [vmem:[#allocation3 + $0x10] sm:$0xff] %vm24_vm0, %v245_v38  ;;  %v162_v40 = vpop.f32.mrf.mxu0  ;;  %v137_v44 = vpop.permute.xlu0 %136 }
 0x1ee   :  { %v167_v41 = vadd.f32 %v162_v40, %v139_v39  ;;  %v140_v48 = vmul.f32 %v137_v44, %v128_v43 }
 0x1f0   :  { %169 = vst [vmem:[#allocation4 + $0x10] sm:$0xff] %v167_v41 }
 0x1f2   :  { %v244_v46 = vpop.xlane.xlu2 %243 }
 0x1f3   :  { %v246_v47 = vadd.f32 %v244_v46, %v238_v45 }
 0x1f5   :  { %248 = vst.msk [vmem:[#allocation3 + $0x18] sm:$0xff] %vm24_vm0, %v246_v47  ;;  %v164_v49 = vpop.f32.mrf.mxu0 }
 0x1f6   :  { %v168_v50 = vadd.f32 %v164_v49, %v140_v48 }
 0x1f8   :  { %170 = vst [vmem:[#allocation4] sm:$0xff] %v168_v50 }
 0x1fd   :  { %v286_v53 = vpop.f32.mrf.mxu1 }
 0x1fe   :  { %v291_v54 = vadd.f32 %v286_v53, %v262_v52 }
 0x200   :  { %293 = vst [vmem:[#allocation4 + $0x18] sm:$0xff] %v291_v54 }
 0x202   :  { %v260_v56 = vpop.permute.xlu1 %259 }
 0x203   :  { %v263_v57 = vmul.f32 %v260_v56, %v251_v55 }
 0x205   :  { %v288_v58 = vpop.f32.mrf.mxu1 }
 0x206   :  { %v292_v59 = vadd.f32 %v288_v58, %v263_v57 }
 0x208   :  { %294 = vst [vmem:[#allocation4 + $0x8] sm:$0xff] %v292_v59 }
 0x209 PF:  { %v300_v61 = vld [vmem:[#allocation3] sm:$0xff]  ;;  %v420_v62 = vmov 0   ;;  %v301_v2 = vld [vmem:[#allocation3 + $0x8] sm:$0xff] }
 0x20a   :  { %v302_v60 = vld [vmem:[#allocation3 + $0x10] sm:$0xff]  ;;  %408 = vset.pattern.permute.xlu1 %v420_v62  ;;  %407 = vset.pattern.permute.xlu0 %v420_v62  ;;  %v304_v0 = vmax.f32 %v300_v61, 1e-20  ;;  %v305_v4 = vmax.f32 %v301_v2, 1e-20 }
 0x20b   :  { %v306_v63 = vmax.f32 %v302_v60, 1e-20  ;;  %v303_v1 = vld [vmem:[#allocation3 + $0x18] sm:$0xff] }
 0x20c   :  { %v307_v3 = vmax.f32 %v303_v1, 1e-20  ;;  %v312_v14 = vld [vmem:[#allocation4 + $0x10] sm:$0xff] }
 0x20d   :  { %409 = vrcp.f32 %v306_v63  ;;  %v313_v15 = vld [vmem:[#allocation4] sm:$0xff] }
 0x20e   :  { %411 = vrcp.f32 %v304_v0  ;;  %v314_v12 = vld [vmem:[#allocation4 + $0x18] sm:$0xff] }
 0x20f   :  { %413 = vrcp.f32 %v307_v3  ;;  %v315_v13 = vld [vmem:[#allocation4 + $0x8] sm:$0xff] }
 0x210   :  { %415 = vrcp.f32 %v305_v4 }
 0x213   :  { %v410_v5 = vpop.eup %409 }
 0x214   :  { %v412_v6 = vpop.eup %411  ;;  %328 = vperm.xlu1 %408, %v410_v5  }
 0x215   :  { %318 = vperm.xlu0 %407, %v412_v6   ;;  %v414_v7 = vpop.eup %413 }
 0x216   :  { %v416_v8 = vpop.eup %415 }
 0x21c   :  { %333 = vperm.xlu1 %408, %v414_v7  }
 0x21d   :  { %323 = vperm.xlu0 %407, %v416_v8  }
 0x286   :  { %v329_v10 = vpop.permute.xlu1 %328 }
 0x287   :  { %v319_v11 = vpop.permute.xlu0 %318  ;;  %v338_v17 = vmul.f32 %v329_v10, %v314_v12 }
 0x288   :  { %v336_v21 = vmul.f32 %v319_v11, %v312_v14 }
 0x28e   :  { %v334_v16 = vpop.permute.xlu1 %333 }
 0x28f   :  { %v339_v18 = vmul.f32 %v334_v16, %v315_v13  ;;  %v324_v19 = vpop.permute.xlu0 %323 }
 0x290   :  { %v337_v22 = vmul.f32 %v324_v19, %v313_v15 }
 0x291   :  { %v375_v23 = vpack.c.bf16 %v339_v18, %v338_v17 }
 0x292   :  { %v370_v24 = vpack.c.bf16 %v337_v22, %v336_v21 }
 0x293   :  { %377 = vst [vmem:[%s550_s5 + $0x8] sm:$0xff] %v375_v23  }
 0x294   :  { %371 = vst [vmem:[%s550_s5] sm:$0xff] %v370_v24  }

</bundles_post_ra>
